<compile_context>
chip_gen: v7x
topology: tpu7x:2x2x1
jax: 0.10.0
libtpu: 0.0.40
codegen_flags: <defaults>
</compile_context>

<pallas_src>
import math
import functools

import jax
import jax.numpy as jnp
from jax.experimental import pallas as pl
from jax.experimental.pallas import tpu as pltpu


# ----------------------------------------------------------------------------
# Pallas kernels
# ----------------------------------------------------------------------------

_VMEM = pl.BlockSpec(memory_space=pltpu.MemorySpace.VMEM)


def _gelu(y):
    # TODO(synk): tanh-approx GELU (TPU friendly); torch F.gelu default is erf GELU.
    return 0.5 * y * (1.0 + jnp.tanh(0.7978845608028654 * (y + 0.044715 * y * y * y)))


def _pick_tile(dim, candidates):
    """Pick the largest candidate tile that divides `dim`, else the full extent."""
    for t in candidates:
        if dim % t == 0:
            return t
    return dim


def _linear_kernel(*refs, has_bias, has_res):
    i = 0
    x_ref = refs[i]; i += 1
    w_ref = refs[i]; i += 1
    b_ref = None
    r_ref = None
    if has_bias:
        b_ref = refs[i]; i += 1
    if has_res:
        r_ref = refs[i]; i += 1
    o_ref = refs[i]; i += 1
    acc_ref = refs[i]

    @pl.when(pl.program_id(2) == 0)
    def _():
        acc_ref[...] = jnp.zeros_like(acc_ref)

    acc_ref[...] += jnp.dot(x_ref[...], w_ref[...],
                            preferred_element_type=jnp.float32)

    @pl.when(pl.program_id(2) == pl.num_programs(2) - 1)
    def _():
        y = acc_ref[...]
        if has_bias:
            y = y + b_ref[...]
        if has_res:
            y = y + r_ref[...]
        o_ref[...] = y


def pallas_linear(x, w, b=None, residual=None):
    """y = x @ w (+ b) (+ residual).  w is bf16 (prepared once), b/residual f32.

    Tiled over (M, N, K) with an f32 VMEM accumulator; reduction axis last,
    M/N marked parallel (megacore / v7x 2-TC sharding).  For the toy config the
    tiles collapse to full-array blocks (grid = (1,1,1))."""
    K = x.shape[-1]
    N = w.shape[-1]
    lead = x.shape[:-1]
    x2 = x.reshape(-1, K).astype(jnp.bfloat16)
    M = x2.shape[0]

    tm = _pick_tile(M, (512, 256, 128))
    tk = _pick_tile(K, (512, 256))
    tn = _pick_tile(N, (512, 256, 128))
    grid = (M // tm, N // tn, K // tk)

    in_specs = [
        pl.BlockSpec((tm, tk), lambda i, j, k: (i, k)),
        pl.BlockSpec((tk, tn), lambda i, j, k: (k, j)),
    ]
    args = [x2, w]
    has_bias = b is not None
    has_res = residual is not None
    if has_bias:
        in_specs.append(pl.BlockSpec((1, tn), lambda i, j, k: (0, j)))
        args.append(b)
    if has_res:
        in_specs.append(pl.BlockSpec((tm, tn), lambda i, j, k: (i, j)))
        args.append(residual.reshape(-1, N).astype(jnp.float32))

    out = pl.pallas_call(
        functools.partial(_linear_kernel, has_bias=has_bias, has_res=has_res),
        out_shape=jax.ShapeDtypeStruct((M, N), jnp.float32),
        grid=grid,
        in_specs=in_specs,
        out_specs=pl.BlockSpec((tm, tn), lambda i, j, k: (i, j)),
        scratch_shapes=[pltpu.VMEM((tm, tn), jnp.float32)],
        compiler_params=pltpu.CompilerParams(
            dimension_semantics=("parallel", "parallel", "arbitrary")),
    )(*args)
    return out.reshape(lead + (N,))


def _ffn_kernel(x_ref, w1_ref, w2_ref, r_ref, o_ref):
    # dot -> GELU -> dot, residual added in the epilogue. f32 accumulation,
    # bf16 operands on the MXU, GELU (tanh) runs on the EUP slot.
    h = jnp.dot(x_ref[...], w1_ref[...], preferred_element_type=jnp.float32)
    h = _gelu(h)
    y = jnp.dot(h.astype(w2_ref.dtype), w2_ref[...],
                preferred_element_type=jnp.float32)
    o_ref[...] = r_ref[...] + y


def pallas_ffn_residual(x, w1, w2):
    """Returns x + conv2(gelu(conv1(x))) (kernel_size=1, bias-free convs), fused."""
    # TODO(synk): very large d_ff would additionally need K-tiling of w1/w2.
    D = x.shape[-1]
    Dff = w1.shape[-1]
    lead = x.shape[:-1]
    xf = x.reshape(-1, D).astype(jnp.float32)
    xb = xf.astype(jnp.bfloat16)
    M = xf.shape[0]
    tm = _pick_tile(M, (512, 256, 128))
    out = pl.pallas_call(
        _ffn_kernel,
        out_shape=jax.ShapeDtypeStruct((M, D), jnp.float32),
        grid=(M // tm,),
        in_specs=[
            pl.BlockSpec((tm, D), lambda i: (i, 0)),
            pl.BlockSpec((D, Dff), lambda i: (0, 0)),
            pl.BlockSpec((Dff, D), lambda i: (0, 0)),
            pl.BlockSpec((tm, D), lambda i: (i, 0)),
        ],
        out_specs=pl.BlockSpec((tm, D), lambda i: (i, 0)),
        compiler_params=pltpu.CompilerParams(
            dimension_semantics=("parallel",)),
    )(xb, w1, w2, xf)
    return out.reshape(lead + (D,))


def _layernorm_kernel(x_ref, g_ref, b_ref, o_ref):
    x = x_ref[...]
    mu = jnp.mean(x, axis=-1, keepdims=True)
    xc = x - mu
    var = jnp.mean(xc * xc, axis=-1, keepdims=True)
    o_ref[...] = xc * jax.lax.rsqrt(var + 1e-5) * g_ref[...] + b_ref[...]


def pallas_layernorm(x, gamma, beta):
    D = x.shape[-1]
    x2 = x.reshape((-1, D)).astype(jnp.float32)
    out = pl.pallas_call(
        _layernorm_kernel,
        out_shape=jax.ShapeDtypeStruct(x2.shape, jnp.float32),
        in_specs=[_VMEM, _VMEM, _VMEM],
        out_specs=_VMEM,
    )(x2, gamma, beta)
    return out.reshape(x.shape)


def _revin_embed_kernel(t_ref, w_ref, b_ref, aw_ref, ab_ref, mask_ref, geo_ref,
                        tok_ref, mu_ref, std_ref):
    # t: [Ltok, S]  (variate rows first, mark rows after); normalize variate rows
    # over time (last axis, unbiased=False), apply RevIN affine, then the inverted
    # embedding GEMM + bias + geo embedding — all in one kernel.
    t = t_ref[...]
    mu = jnp.mean(t, axis=1, keepdims=True)                    # [Ltok, 1]
    tc = t - mu
    var = jnp.mean(tc * tc, axis=1, keepdims=True)
    std = jnp.sqrt(var + 1e-5)
    normed = (tc / std) * aw_ref[...] + ab_ref[...]
    m = mask_ref[...]                                          # 1.0 for variate rows
    xn = m * normed + (1.0 - m) * t
    emb = jnp.dot(xn.astype(jnp.bfloat16), w_ref[...],
                  preferred_element_type=jnp.float32)          # [Ltok, D]
    tok_ref[...] = emb + b_ref[...] + geo_ref[...]
    mu_ref[...] = mu
    std_ref[...] = std


def pallas_revin_embed(tok_in, emb_w, emb_b, aw_col, ab_col, var_mask, geo):
    B, Ltok, S = tok_in.shape
    D = emb_w.shape[-1]
    out_shapes = (
        jax.ShapeDtypeStruct((B, Ltok, D), jnp.float32),
        jax.ShapeDtypeStruct((B, Ltok, 1), jnp.float32),
        jax.ShapeDtypeStruct((B, Ltok, 1), jnp.float32),
    )
    return pl.pallas_call(
        _revin_embed_kernel,
        out_shape=out_shapes,
        grid=(B,),
        in_specs=[
            pl.BlockSpec((None, Ltok, S), lambda b: (b, 0, 0)),
            pl.BlockSpec((S, D), lambda b: (0, 0)),
            pl.BlockSpec((1, D), lambda b: (0, 0)),
            pl.BlockSpec((Ltok, 1), lambda b: (0, 0)),
            pl.BlockSpec((Ltok, 1), lambda b: (0, 0)),
            pl.BlockSpec((Ltok, 1), lambda b: (0, 0)),
            pl.BlockSpec((Ltok, D), lambda b: (0, 0)),
        ],
        out_specs=(
            pl.BlockSpec((None, Ltok, D), lambda b: (b, 0, 0)),
            pl.BlockSpec((None, Ltok, 1), lambda b: (b, 0, 0)),
            pl.BlockSpec((None, Ltok, 1), lambda b: (b, 0, 0)),
        ),
        compiler_params=pltpu.CompilerParams(
            dimension_semantics=("parallel",)),
    )(tok_in.astype(jnp.float32), emb_w, emb_b, aw_col, ab_col, var_mask, geo)


# ----------------------------------------------------------------------------
# Plain-JAX building blocks (small / data-dependent glue)
# ----------------------------------------------------------------------------

def series_decomp(x, kernel_size):
    """s_series_decomp: moving average (AvgPool1d, replicate padding) along axis 1."""
    pad = (kernel_size - 1) // 2
    front = jnp.repeat(x[:, :1, :], pad, axis=1)
    end = jnp.repeat(x[:, -1:, :], pad, axis=1)
    xp = jnp.concatenate([front, x, end], axis=1)
    cs = jnp.cumsum(jnp.pad(xp, ((0, 0), (1, 0), (0, 0))), axis=1)
    mov = (cs[:, kernel_size:, :] - cs[:, :-kernel_size, :]) / float(kernel_size)
    return x - mov, mov


def auto_correlation(q, k, v, factor):
    """AutoCorrelation (Autoformer), eval-mode time_delay_agg_inference.
    q, k, v: [B, L, H, E] -> returns [B, L, H, E]."""
    B, L, H, E = q.shape
    qf = jnp.fft.rfft(jnp.transpose(q, (0, 2, 3, 1)), axis=-1)
    kf = jnp.fft.rfft(jnp.transpose(k, (0, 2, 3, 1)), axis=-1)
    corr = jnp.fft.irfft(qf * jnp.conj(kf), n=L, axis=-1)        # [B,H,E,L]
    values = jnp.transpose(v, (0, 2, 3, 1))                      # [B,H,E,L]

    top_k = int(factor * math.log(L))
    mean_value = jnp.mean(jnp.mean(corr, axis=1), axis=1)        # [B, L]
    weights, delay = jax.lax.top_k(mean_value, top_k)            # [B, top_k]
    tmp_corr = jax.nn.softmax(weights, axis=-1)

    # vectorized top-k delay aggregation: single gather over all delays
    init_index = jnp.arange(L, dtype=jnp.int32)
    idx = (init_index[None, None, :] + delay[:, :, None].astype(jnp.int32)) % L  # [B,K,L]
    idx = jnp.broadcast_to(idx[:, None, None, :, :], (B, H, E, top_k, L))
    vals = jnp.broadcast_to(values[:, :, :, None, :], (B, H, E, top_k, L))
    pattern = jnp.take_along_axis(vals, idx, axis=-1)            # [B,H,E,K,L]
    delays_agg = jnp.sum(pattern * tmp_corr[:, None, None, :, None], axis=3)
    return jnp.transpose(delays_agg, (0, 3, 1, 2))               # [B, L, H, E]


def flow_attention(q, k, v):
    """FlowAttention (Flowformer / Time-Series-Library). q,k,v: [B, L, H, D]."""
    q = jnp.transpose(q, (0, 2, 1, 3))
    k = jnp.transpose(k, (0, 2, 1, 3))
    v = jnp.transpose(v, (0, 2, 1, 3))
    q = jax.nn.sigmoid(q)
    k = jax.nn.sigmoid(k)
    eps = 1e-6
    norm_row = 1.0 / jnp.einsum("nhld,nhd->nhl", q + eps, jnp.sum(k, axis=2) + eps)
    norm_col = 1.0 / jnp.einsum("nhsd,nhd->nhs", k + eps, jnp.sum(q, axis=2) + eps)
    row_ref = jnp.einsum("nhld,nhd->nhl", q + eps,
                         jnp.sum(k * norm_col[..., None], axis=2) + eps)
    col_ref = jnp.einsum("nhsd,nhd->nhs", k + eps,
                         jnp.sum(q * norm_row[..., None], axis=2) + eps)
    L = q.shape[2]
    S = k.shape[2]
    row_ref = jax.nn.sigmoid(row_ref * (float(L) / float(S)))
    col_ref = jax.nn.softmax(col_ref, axis=-1) * float(S)
    kv = jnp.einsum("nhsd,nhsm->nhdm", k, v * col_ref[..., None])
    x = jnp.einsum("nhld,nhdm->nhlm", q, kv) * norm_row[..., None] * row_ref[..., None]
    return jnp.transpose(x, (0, 2, 1, 3))                        # [B, L, H, D]


# ----------------------------------------------------------------------------
# Model (eval mode, dropout = 0)
# ----------------------------------------------------------------------------

def ts_encoder_layer(x, trend, lp, cfg):
    B, L, D = x.shape
    H = cfg["n_heads"]
    ma = cfg["moving_avg"]

    # --- temporal branch: AutoCorrelation attention (fused QKV GEMM) ---
    qkv = pallas_linear(x, lp["t_wqkv"], lp["t_bqkv"])           # [B, L, 3D]
    q = qkv[..., :D].reshape(B, L, H, -1)
    k = qkv[..., D:2 * D].reshape(B, L, H, -1)
    v = qkv[..., 2 * D:].reshape(B, L, H, -1)
    a = auto_correlation(q, k, v, cfg["factor"]).reshape(B, L, D)
    x = pallas_linear(a, lp["t_wo"], lp["t_bo"], residual=x)     # x + out_proj(a)
    x, t1 = series_decomp(x, ma)

    # --- spatial branch: FlowAttention over the feature axis (fused QKV GEMM) ---
    xt = jnp.transpose(x, (0, 2, 1))                             # [B, d_model, L_tok]
    Ls = xt.shape[1]
    dk = L // H
    hdk = H * dk
    qkv_s = pallas_linear(xt, lp["s_wqkv"], lp["s_bqkv"])        # [B, d_model, 3*hdk]
    q = qkv_s[..., :hdk].reshape(B, Ls, H, dk)
    k = qkv_s[..., hdk:2 * hdk].reshape(B, Ls, H, dk)
    v = qkv_s[..., 2 * hdk:].reshape(B, Ls, H, dk)
    f = flow_attention(q, k, v).reshape(B, Ls, hdk)
    xt = pallas_linear(f, lp["s_wo"], lp["s_bo"], residual=xt)   # xt + out_proj(f)
    x = jnp.transpose(xt, (0, 2, 1))
    x, t2 = series_decomp(x, ma)

    # --- FFN: Conv1d(k=1, bias=False) pair fused into one kernel (+residual) ---
    y = pallas_ffn_residual(x, lp["ffn_w1"], lp["ffn_w2"])       # x + ffn(x)
    res, t3 = series_decomp(y, ma)

    trend = trend + t1 + t2 + t3
    return res, trend


def encoder(x, origin_trend, params, cfg):
    trend = origin_trend
    for lp in params["layers"]:
        x, trend = ts_encoder_layer(x, trend, lp, cfg)
    x = pallas_layernorm(x, params["norm_g"], params["norm_b"])
    return x, trend


def forecast(x_enc, x_mark_enc, params, cfg):
    B, S, N = x_enc.shape

    # fused RevIN + transpose/concat + inverted embedding + geo embedding
    x_all = jnp.concatenate([x_enc, x_mark_enc], axis=-1)        # [B, S, N+M]
    tok_in = jnp.transpose(x_all, (0, 2, 1))                     # [B, N+M, S]
    enc_out, mu, std = pallas_revin_embed(
        tok_in, params["emb_w"], params["emb_b"],
        params["aff_w_col"], params["aff_b_col"],
        params["var_mask"], params["geo_full"])
    means = mu[:, :N, 0]                                         # [B, N]
    stdev = std[:, :N, 0]                                        # [B, N]

    L = enc_out.shape[1]
    origin_trend = jnp.zeros((B, L, cfg["d_model"]), jnp.float32)
    seasonal, trend = encoder(enc_out, origin_trend, params, cfg)

    # seasonal@Wp + trend@Wt == concat(seasonal, trend) @ [[Wp];[Wt]]  (one GEMM)
    cat = jnp.concatenate([seasonal, trend], axis=-1)            # [B, L, 2D]
    dec = pallas_linear(cat, params["proj_cat_w"], params["proj_cat_b"])  # [B, L, P]
    dec_out = jnp.transpose(dec, (0, 2, 1))[:, :, :N]            # [B, P, N]

    # de-normalize
    dec_out = dec_out - params["aff_b_row"]
    dec_out = dec_out / (params["aff_w_row"] + 1e-10)
    dec_out = dec_out * stdev[:, None, :]
    dec_out = dec_out + means[:, None, :]
    return dec_out


def forward(x_enc, x_mark_enc, x_dec, x_mark_dec, params, cfg):
    dec_out = forecast(x_enc, x_mark_enc, params, cfg)
    return dec_out[:, -cfg["pred_len"]:, :]


# ----------------------------------------------------------------------------
# Deterministic parameter init + one-time fusion / dtype preparation
# ----------------------------------------------------------------------------

def init_params(key, cfg):
    N = cfg["node_num"]
    S = cfg["seq_len"]
    D = cfg["d_model"]
    P = cfg["pred_len"]
    H = cfg["n_heads"]
    Dff = cfg["d_ff"]
    M = cfg["mark_dim"]
    Ltok = N + M
    keys = iter(jax.random.split(key, 128))

    def w(shape, scale=0.05):
        return jax.random.normal(next(keys), shape, jnp.float32) * scale

    params = {
        "emb_w": w((S, D)), "emb_b": w((D,)),
        # TODO(synk): the real module loads geo coordinates from configs.root_path;
        # replaced by a deterministic learned per-node embedding added to node tokens.
        "geo_emb": w((N, D)),
        "proj_w": w((D, P)), "proj_b": w((P,)),
        "trend_proj_w": w((D, P)), "trend_proj_b": w((P,)),
        "norm_g": jnp.ones((D,), jnp.float32), "norm_b": jnp.zeros((D,), jnp.float32),
        "affine_w": jnp.ones((1, 1, N), jnp.float32),
        "affine_b": jnp.zeros((1, 1, N), jnp.float32),
        "layers": [],
    }
    dk_s = Ltok // H
    for _ in range(cfg["e_layers"]):
        lp = {
            "t_wq": w((D, D)), "t_bq": w((D,)),
            "t_wk": w((D, D)), "t_bk": w((D,)),
            "t_wv": w((D, D)), "t_bv": w((D,)),
            "t_wo": w((D, D)), "t_bo": w((D,)),
            "s_wq": w((Ltok, H * dk_s)), "s_bq": w((H * dk_s,)),
            "s_wk": w((Ltok, H * dk_s)), "s_bk": w((H * dk_s,)),
            "s_wv": w((Ltok, H * dk_s)), "s_bv": w((H * dk_s,)),
            "s_wo": w((H * dk_s, Ltok)), "s_bo": w((Ltok,)),
            "ffn_w1": w((D, Dff)),
            "ffn_w2": w((Dff, D)),
        }
        params["layers"].append(lp)
    return params


def prepare_params(raw, cfg):
    """One-time fusion + dtype prep: concat QKV / proj weights, cast GEMM weights to
    bf16, reshape biases to (1, N) f32. Keeps per-call converts out of the hot path."""
    N = cfg["node_num"]
    M = cfg["mark_dim"]
    D = cfg["d_model"]
    Ltok = N + M

    p = {
        "emb_w": raw["emb_w"].astype(jnp.bfloat16),
        "emb_b": raw["emb_b"].reshape(1, D).astype(jnp.float32),
        "geo_full": jnp.concatenate(
            [raw["geo_emb"], jnp.zeros((M, D), jnp.float32)], axis=0),
        "var_mask": jnp.concatenate(
            [jnp.ones((N,), jnp.float32), jnp.zeros((M,), jnp.float32)]).reshape(Ltok, 1),
        "norm_g": raw["norm_g"].reshape(1, D).astype(jnp.float32),
        "norm_b": raw["norm_b"].reshape(1, D).astype(jnp.float32),
        "layers": [],
    }
    aw = raw["affine_w"].reshape(N).astype(jnp.float32)
    ab = raw["affine_b"].reshape(N).astype(jnp.float32)
    p["aff_w_col"] = jnp.concatenate([aw, jnp.ones((M,), jnp.float32)]).reshape(Ltok, 1)
    p["aff_b_col"] = jnp.concatenate([ab, jnp.zeros((M,), jnp.float32)]).reshape(Ltok, 1)
    p["aff_w_row"] = aw.reshape(1, 1, N)
    p["aff_b_row"] = ab.reshape(1, 1, N)
    p["proj_cat_w"] = jnp.concatenate(
        [raw["proj_w"], raw["trend_proj_w"]], axis=0).astype(jnp.bfloat16)
    p["proj_cat_b"] = (raw["proj_b"] + raw["trend_proj_b"]).reshape(1, -1).astype(jnp.float32)

    for lr in raw["layers"]:
        lp = {
            "t_wqkv": jnp.concatenate(
                [lr["t_wq"], lr["t_wk"], lr["t_wv"]], axis=1).astype(jnp.bfloat16),
            "t_bqkv": jnp.concatenate(
                [lr["t_bq"], lr["t_bk"], lr["t_bv"]]).reshape(1, -1).astype(jnp.float32),
            "t_wo": lr["t_wo"].astype(jnp.bfloat16),
            "t_bo": lr["t_bo"].reshape(1, -1).astype(jnp.float32),
            "s_wqkv": jnp.concatenate(
                [lr["s_wq"], lr["s_wk"], lr["s_wv"]], axis=1).astype(jnp.bfloat16),
            "s_bqkv": jnp.concatenate(
                [lr["s_bq"], lr["s_bk"], lr["s_bv"]]).reshape(1, -1).astype(jnp.float32),
            "s_wo": lr["s_wo"].astype(jnp.bfloat16),
            "s_bo": lr["s_bo"].reshape(1, -1).astype(jnp.float32),
            "ffn_w1": lr["ffn_w1"].astype(jnp.bfloat16),
            "ffn_w2": lr["ffn_w2"].astype(jnp.bfloat16),
        }
        p["layers"].append(lp)
    return p


# ----------------------------------------------------------------------------
# Main
# ----------------------------------------------------------------------------

if __name__ == "__main__":
    cfg = dict(
        seq_len=16, label_len=8, pred_len=8,
        node_num=4, enc_in=4, mark_dim=6,   # tokens = node_num + 6 (matches AttentionLayer dim)
        d_model=32, n_heads=4, d_ff=64, e_layers=2,
        moving_avg=3, factor=1,
    )

    key = jax.random.PRNGKey(0)
    kp, kx, km, kd, kmd = jax.random.split(key, 5)
    raw_params = init_params(kp, cfg)
    params = prepare_params(raw_params, cfg)

    B = 2
    x_enc = jax.random.normal(kx, (B, cfg["seq_len"], cfg["enc_in"]), jnp.float32)
    x_mark_enc = jax.random.normal(km, (B, cfg["seq_len"], cfg["mark_dim"]), jnp.float32)
    x_dec = jax.random.normal(kd, (B, cfg["label_len"] + cfg["pred_len"], cfg["enc_in"]), jnp.float32)
    x_mark_dec = jax.random.normal(kmd, (B, cfg["label_len"] + cfg["pred_len"], cfg["mark_dim"]), jnp.float32)

    fwd = jax.jit(lambda p, a, b_, c, d: forward(a, b_, c, d, p, cfg))
    out = fwd(params, x_enc, x_mark_enc, x_dec, x_mark_dec)
    out = jax.block_until_ready(out)

    assert out.shape == (B, cfg["pred_len"], cfg["enc_in"]), out.shape
    assert bool(jnp.all(jnp.isfinite(out)))
    print("KERNEL_OK")
</pallas_src>

<mosaic_0001>
module attributes {stable_mosaic.version = 11 : i64} {
  func.func private @main(%arg0: i32) attributes {dimension_semantics = [#tpu.dimension_semantics<core_parallel>], iteration_bounds = array<i64: 2>, tpu.core_type = #tpu.core_type<sc_scalar_subcore>, window_params = []} {
    return
  }
}

module attributes {stable_mosaic.version = 11 : i64} {
  func.func private @main(%arg0: i32) attributes {dimension_semantics = [#tpu.dimension_semantics<core_parallel>], iteration_bounds = array<i64: 2>, tpu.core_type = #tpu.core_type<sc_scalar_subcore>, window_params = []} {
    return
  }
}

module attributes {stable_mosaic.version = 11 : i64} {
  func.func @_revin_embed_kernel(%arg0: i32, %arg1: memref<1x10x16xf32, #tpu.memory_space<vmem>>, %arg2: memref<16x32xbf16, #tpu.memory_space<vmem>>, %arg3: memref<1x32xf32, #tpu.memory_space<vmem>>, %arg4: memref<10x1xf32, #tpu.memory_space<vmem>>, %arg5: memref<10x1xf32, #tpu.memory_space<vmem>>, %arg6: memref<10x1xf32, #tpu.memory_space<vmem>>, %arg7: memref<10x32xf32, #tpu.memory_space<vmem>>, %arg8: memref<1x10x32xf32, #tpu.memory_space<vmem>>, %arg9: memref<1x10x1xf32, #tpu.memory_space<vmem>>, %arg10: memref<1x10x1xf32, #tpu.memory_space<vmem>>) attributes {dimension_semantics = [#tpu.dimension_semantics<parallel>], iteration_bounds = array<i64: 2>, scalar_prefetch = 0 : i64, scratch_operands = 0 : i64, tpu.core_type = #tpu.core_type<tc>, window_params = [{transform_indices = @transform_0, window_bounds = array<i64: 1, 10, 16>}, {pipeline_mode = #tpu.pipeline_mode<synchronous>, transform_indices = @transform_1, window_bounds = array<i64: 16, 32>}, {pipeline_mode = #tpu.pipeline_mode<synchronous>, transform_indices = @transform_2, window_bounds = array<i64: 1, 32>}, {pipeline_mode = #tpu.pipeline_mode<synchronous>, transform_indices = @transform_3, window_bounds = array<i64: 10, 1>}, {pipeline_mode = #tpu.pipeline_mode<synchronous>, transform_indices = @transform_4, window_bounds = array<i64: 10, 1>}, {pipeline_mode = #tpu.pipeline_mode<synchronous>, transform_indices = @transform_5, window_bounds = array<i64: 10, 1>}, {pipeline_mode = #tpu.pipeline_mode<synchronous>, transform_indices = @transform_6, window_bounds = array<i64: 10, 32>}, {transform_indices = @transform_7, window_bounds = array<i64: 1, 10, 32>}, {transform_indices = @transform_8, window_bounds = array<i64: 1, 10, 1>}, {transform_indices = @transform_9, window_bounds = array<i64: 1, 10, 1>}]} {
    %c0 = arith.constant 0 : index
    %c0_0 = arith.constant 0 : index
    %c0_1 = arith.constant 0 : index
    %0 = vector.load %arg1[%c0, %c0_0, %c0_1] : memref<1x10x16xf32, #tpu.memory_space<vmem>>, vector<1x10x16xf32>
    %1 = vector.shape_cast %0 : vector<1x10x16xf32> to vector<10x16xf32>
    %cst = arith.constant dense<0.000000e+00> : vector<10xf32>
    %2 = vector.multi_reduction <add>, %1, %cst [1] : vector<10x16xf32> to vector<10xf32>
    %3 = vector.shape_cast %2 : vector<10xf32> to vector<10x1xf32>
    %cst_2 = arith.constant 1.600000e+01 : f32
    %4 = vector.broadcast %cst_2 : f32 to vector<10x1xf32>
    %5 = arith.divf %3, %4 : vector<10x1xf32>
    %6 = vector.broadcast %5 : vector<10x1xf32> to vector<10x16xf32>
    %7 = arith.subf %1, %6 : vector<10x16xf32>
    %8 = arith.mulf %7, %7 : vector<10x16xf32>
    %cst_3 = arith.constant dense<0.000000e+00> : vector<10xf32>
    %9 = vector.multi_reduction <add>, %8, %cst_3 [1] : vector<10x16xf32> to vector<10xf32>
    %10 = vector.shape_cast %9 : vector<10xf32> to vector<10x1xf32>
    %cst_4 = arith.constant 1.600000e+01 : f32
    %11 = vector.broadcast %cst_4 : f32 to vector<10x1xf32>
    %12 = arith.divf %10, %11 : vector<10x1xf32>
    %cst_5 = arith.constant 9.99999974E-6 : f32
    %13 = vector.broadcast %cst_5 : f32 to vector<10x1xf32>
    %14 = arith.addf %12, %13 : vector<10x1xf32>
    %15 = math.sqrt %14 : vector<10x1xf32>
    %16 = vector.broadcast %15 : vector<10x1xf32> to vector<10x16xf32>
    %17 = arith.divf %7, %16 : vector<10x16xf32>
    %c0_6 = arith.constant 0 : index
    %c0_7 = arith.constant 0 : index
    %18 = vector.load %arg4[%c0_6, %c0_7] : memref<10x1xf32, #tpu.memory_space<vmem>>, vector<10x1xf32>
    %19 = vector.broadcast %18 : vector<10x1xf32> to vector<10x16xf32>
    %20 = arith.mulf %17, %19 : vector<10x16xf32>
    %c0_8 = arith.constant 0 : index
    %c0_9 = arith.constant 0 : index
    %21 = vector.load %arg5[%c0_8, %c0_9] : memref<10x1xf32, #tpu.memory_space<vmem>>, vector<10x1xf32>
    %22 = vector.broadcast %21 : vector<10x1xf32> to vector<10x16xf32>
    %23 = arith.addf %20, %22 : vector<10x16xf32>
    %c0_10 = arith.constant 0 : index
    %c0_11 = arith.constant 0 : index
    %24 = vector.load %arg6[%c0_10, %c0_11] : memref<10x1xf32, #tpu.memory_space<vmem>>, vector<10x1xf32>
    %25 = vector.broadcast %24 : vector<10x1xf32> to vector<10x16xf32>
    %26 = arith.mulf %25, %23 : vector<10x16xf32>
    %cst_12 = arith.constant 1.000000e+00 : f32
    %27 = vector.broadcast %cst_12 : f32 to vector<10x1xf32>
    %28 = arith.subf %27, %24 : vector<10x1xf32>
    %29 = vector.broadcast %28 : vector<10x1xf32> to vector<10x16xf32>
    %30 = arith.mulf %29, %1 : vector<10x16xf32>
    %31 = arith.addf %26, %30 : vector<10x16xf32>
    %32 = arith.truncf %31 : vector<10x16xf32> to vector<10x16xbf16>
    %c0_13 = arith.constant 0 : index
    %c0_14 = arith.constant 0 : index
    %33 = vector.load %arg2[%c0_13, %c0_14] : memref<16x32xbf16, #tpu.memory_space<vmem>>, vector<16x32xbf16>
    %cst_15 = arith.constant dense<0.000000e+00> : vector<10x32xf32>
    %34 = tpu.matmul %32, %33, %cst_15 {dimension_numbers = #tpu.dot_dimension_numbers<[1], [0], [0], [1], [0, 0, 1, 1], [], []>} : vector<10x16xbf16>, vector<16x32xbf16>, vector<10x32xf32> -> vector<10x32xf32>
    %c0_16 = arith.constant 0 : index
    %c0_17 = arith.constant 0 : index
    %35 = vector.load %arg3[%c0_16, %c0_17] : memref<1x32xf32, #tpu.memory_space<vmem>>, vector<1x32xf32>
    %36 = vector.broadcast %35 : vector<1x32xf32> to vector<10x32xf32>
    %37 = arith.addf %34, %36 : vector<10x32xf32>
    %c0_18 = arith.constant 0 : index
    %c0_19 = arith.constant 0 : index
    %38 = vector.load %arg7[%c0_18, %c0_19] : memref<10x32xf32, #tpu.memory_space<vmem>>, vector<10x32xf32>
    %39 = arith.addf %37, %38 : vector<10x32xf32>
    %c0_20 = arith.constant 0 : index
    %c0_21 = arith.constant 0 : index
    %c0_22 = arith.constant 0 : index
    %40 = vector.load %arg8[%c0_20, %c0_21, %c0_22] : memref<1x10x32xf32, #tpu.memory_space<vmem>>, vector<1x10x32xf32>
    %41 = vector.shape_cast %40 : vector<1x10x32xf32> to vector<10x32xf32>
    %42 = vector.shape_cast %39 : vector<10x32xf32> to vector<1x10x32xf32>
    tpu.vector_store %arg8[%c0_20, %c0_21, %c0_22], %42 {strides = array<i32>} : memref<1x10x32xf32, #tpu.memory_space<vmem>>, vector<1x10x32xf32>,
    %c0_23 = arith.constant 0 : index
    %c0_24 = arith.constant 0 : index
    %c0_25 = arith.constant 0 : index
    %43 = vector.load %arg9[%c0_23, %c0_24, %c0_25] : memref<1x10x1xf32, #tpu.memory_space<vmem>>, vector<1x10x1xf32>
    %44 = vector.shape_cast %43 : vector<1x10x1xf32> to vector<10x1xf32>
    %45 = vector.shape_cast %5 : vector<10x1xf32> to vector<1x10x1xf32>
    tpu.vector_store %arg9[%c0_23, %c0_24, %c0_25], %45 {strides = array<i32>} : memref<1x10x1xf32, #tpu.memory_space<vmem>>, vector<1x10x1xf32>,
    %c0_26 = arith.constant 0 : index
    %c0_27 = arith.constant 0 : index
    %c0_28 = arith.constant 0 : index
    %46 = vector.load %arg10[%c0_26, %c0_27, %c0_28] : memref<1x10x1xf32, #tpu.memory_space<vmem>>, vector<1x10x1xf32>
    %47 = vector.shape_cast %46 : vector<1x10x1xf32> to vector<10x1xf32>
    %48 = vector.shape_cast %15 : vector<10x1xf32> to vector<1x10x1xf32>
    tpu.vector_store %arg10[%c0_26, %c0_27, %c0_28], %48 {strides = array<i32>} : memref<1x10x1xf32, #tpu.memory_space<vmem>>, vector<1x10x1xf32>,
    return
  }
  func.func @transform_0(%arg0: i32) -> (i32, i32, i32) {
    %c0_i32 = arith.constant 0 : i32
    %c0_i32_0 = arith.constant 0 : i32
    %c0_i32_1 = arith.constant 0 : i32
    return %arg0, %c0_i32, %c0_i32_0 : i32, i32, i32
  }
  func.func @transform_1(%arg0: i32) -> (i32, i32) {
    %c0_i32 = arith.constant 0 : i32
    %c0_i32_0 = arith.constant 0 : i32
    %c0_i32_1 = arith.constant 0 : i32
    return %c0_i32, %c0_i32_0 : i32, i32
  }
  func.func @transform_2(%arg0: i32) -> (i32, i32) {
    %c0_i32 = arith.constant 0 : i32
    %c0_i32_0 = arith.constant 0 : i32
    %c0_i32_1 = arith.constant 0 : i32
    return %c0_i32, %c0_i32_0 : i32, i32
  }
  func.func @transform_3(%arg0: i32) -> (i32, i32) {
    %c0_i32 = arith.constant 0 : i32
    %c0_i32_0 = arith.constant 0 : i32
    %c0_i32_1 = arith.constant 0 : i32
    return %c0_i32, %c0_i32_0 : i32, i32
  }
  func.func @transform_4(%arg0: i32) -> (i32, i32) {
    %c0_i32 = arith.constant 0 : i32
    %c0_i32_0 = arith.constant 0 : i32
    %c0_i32_1 = arith.constant 0 : i32
    return %c0_i32, %c0_i32_0 : i32, i32
  }
  func.func @transform_5(%arg0: i32) -> (i32, i32) {
    %c0_i32 = arith.constant 0 : i32
    %c0_i32_0 = arith.constant 0 : i32
    %c0_i32_1 = arith.constant 0 : i32
    return %c0_i32, %c0_i32_0 : i32, i32
  }
  func.func @transform_6(%arg0: i32) -> (i32, i32) {
    %c0_i32 = arith.constant 0 : i32
    %c0_i32_0 = arith.constant 0 : i32
    %c0_i32_1 = arith.constant 0 : i32
    return %c0_i32, %c0_i32_0 : i32, i32
  }
  func.func @transform_7(%arg0: i32) -> (i32, i32, i32) {
    %c0_i32 = arith.constant 0 : i32
    %c0_i32_0 = arith.constant 0 : i32
    %c0_i32_1 = arith.constant 0 : i32
    return %arg0, %c0_i32, %c0_i32_0 : i32, i32, i32
  }
  func.func @transform_8(%arg0: i32) -> (i32, i32, i32) {
    %c0_i32 = arith.constant 0 : i32
    %c0_i32_0 = arith.constant 0 : i32
    %c0_i32_1 = arith.constant 0 : i32
    return %arg0, %c0_i32, %c0_i32_0 : i32, i32, i32
  }
  func.func @transform_9(%arg0: i32) -> (i32, i32, i32) {
    %c0_i32 = arith.constant 0 : i32
    %c0_i32_0 = arith.constant 0 : i32
    %c0_i32_1 = arith.constant 0 : i32
    return %arg0, %c0_i32, %c0_i32_0 : i32, i32, i32
  }
}

module attributes {stable_mosaic.version = 11 : i64} {
  func.func @_linear_kernel(%arg0: i32, %arg1: i32, %arg2: i32, %arg3: memref<20x32xbf16, #tpu.memory_space<vmem>>, %arg4: memref<32x96xbf16, #tpu.memory_space<vmem>>, %arg5: memref<1x96xf32, #tpu.memory_space<vmem>>, %arg6: memref<20x96xf32, #tpu.memory_space<vmem>>, %arg7: memref<20x96xf32, #tpu.memory_space<vmem>>) attributes {dimension_semantics = [#tpu.dimension_semantics<parallel>, #tpu.dimension_semantics<parallel>, #tpu.dimension_semantics<arbitrary>], iteration_bounds = array<i64: 1, 1, 1>, scalar_prefetch = 0 : i64, scratch_operands = 1 : i64, tpu.core_type = #tpu.core_type<tc>, window_params = [{transform_indices = @transform_0, window_bounds = array<i64: 20, 32>}, {transform_indices = @transform_1, window_bounds = array<i64: 32, 96>}, {transform_indices = @transform_2, window_bounds = array<i64: 1, 96>}, {transform_indices = @transform_3, window_bounds = array<i64: 20, 96>}]} {
    %c0_i32 = arith.constant 0 : i32
    %0 = arith.cmpi eq, %arg2, %c0_i32 : i32
    %1 = arith.extui %0 : i1 to i32
    %c0_i32_0 = arith.constant 0 : i32
    %2 = arith.cmpi ne, %1, %c0_i32_0 : i32
    scf.if %2 {
      %cst_10 = arith.constant 0.000000e+00 : f32
      %12 = vector.broadcast %cst_10 : f32 to vector<20x96xf32>
      %c0_11 = arith.constant 0 : index
      %c0_12 = arith.constant 0 : index
      %13 = vector.load %arg7[%c0_11, %c0_12] : memref<20x96xf32, #tpu.memory_space<vmem>>, vector<20x96xf32>
      tpu.vector_store %arg7[%c0_11, %c0_12], %12 {strides = array<i32>} : memref<20x96xf32, #tpu.memory_space<vmem>>, vector<20x96xf32>,
    } else {
    }
    %c0 = arith.constant 0 : index
    %c0_1 = arith.constant 0 : index
    %3 = vector.load %arg7[%c0, %c0_1] : memref<20x96xf32, #tpu.memory_space<vmem>>, vector<20x96xf32>
    %c0_2 = arith.constant 0 : index
    %c0_3 = arith.constant 0 : index
    %4 = vector.load %arg3[%c0_2, %c0_3] : memref<20x32xbf16, #tpu.memory_space<vmem>>, vector<20x32xbf16>
    %c0_4 = arith.constant 0 : index
    %c0_5 = arith.constant 0 : index
    %5 = vector.load %arg4[%c0_4, %c0_5] : memref<32x96xbf16, #tpu.memory_space<vmem>>, vector<32x96xbf16>
    %cst = arith.constant dense<0.000000e+00> : vector<20x96xf32>
    %6 = tpu.matmul %4, %5, %cst {dimension_numbers = #tpu.dot_dimension_numbers<[1], [0], [0], [1], [0, 0, 1, 1], [], []>} : vector<20x32xbf16>, vector<32x96xbf16>, vector<20x96xf32> -> vector<20x96xf32>
    %7 = arith.addf %3, %6 : vector<20x96xf32>
    %c0_6 = arith.constant 0 : index
    %c0_7 = arith.constant 0 : index
    %8 = vector.load %arg7[%c0_6, %c0_7] : memref<20x96xf32, #tpu.memory_space<vmem>>, vector<20x96xf32>
    tpu.vector_store %arg7[%c0_6, %c0_7], %7 {strides = array<i32>} : memref<20x96xf32, #tpu.memory_space<vmem>>, vector<20x96xf32>,
    %c0_i32_8 = arith.constant 0 : i32
    %9 = arith.cmpi eq, %arg2, %c0_i32_8 : i32
    %10 = arith.extui %9 : i1 to i32
    %c0_i32_9 = arith.constant 0 : i32
    %11 = arith.cmpi ne, %10, %c0_i32_9 : i32
    scf.if %11 {
      %c0_10 = arith.constant 0 : index
      %c0_11 = arith.constant 0 : index
      %12 = vector.load %arg7[%c0_10, %c0_11] : memref<20x96xf32, #tpu.memory_space<vmem>>, vector<20x96xf32>
      %c0_12 = arith.constant 0 : index
      %c0_13 = arith.constant 0 : index
      %13 = vector.load %arg5[%c0_12, %c0_13] : memref<1x96xf32, #tpu.memory_space<vmem>>, vector<1x96xf32>
      %14 = vector.broadcast %13 : vector<1x96xf32> to vector<20x96xf32>
      %15 = arith.addf %12, %14 : vector<20x96xf32>
      %c0_14 = arith.constant 0 : index
      %c0_15 = arith.constant 0 : index
      %16 = vector.load %arg6[%c0_14, %c0_15] : memref<20x96xf32, #tpu.memory_space<vmem>>, vector<20x96xf32>
      tpu.vector_store %arg6[%c0_14, %c0_15], %15 {strides = array<i32>} : memref<20x96xf32, #tpu.memory_space<vmem>>, vector<20x96xf32>,
    } else {
    }
    return
  }
  func.func @transform_0(%arg0: i32, %arg1: i32, %arg2: i32) -> (i32, i32) {
    %c0_i32 = arith.constant 0 : i32
    return %arg0, %arg2 : i32, i32
  }
  func.func @transform_1(%arg0: i32, %arg1: i32, %arg2: i32) -> (i32, i32) {
    %c0_i32 = arith.constant 0 : i32
    return %arg2, %arg1 : i32, i32
  }
  func.func @transform_2(%arg0: i32, %arg1: i32, %arg2: i32) -> (i32, i32) {
    %c0_i32 = arith.constant 0 : i32
    %c0_i32_0 = arith.constant 0 : i32
    return %c0_i32, %arg1 : i32, i32
  }
  func.func @transform_3(%arg0: i32, %arg1: i32, %arg2: i32) -> (i32, i32) {
    %c0_i32 = arith.constant 0 : i32
    return %arg0, %arg1 : i32, i32
  }
}

module attributes {stable_mosaic.version = 11 : i64} {
  func.func @_linear_kernel(%arg0: i32, %arg1: i32, %arg2: i32, %arg3: memref<20x32xbf16, #tpu.memory_space<vmem>>, %arg4: memref<32x32xbf16, #tpu.memory_space<vmem>>, %arg5: memref<1x32xf32, #tpu.memory_space<vmem>>, %arg6: memref<20x32xf32, #tpu.memory_space<vmem>>, %arg7: memref<20x32xf32, #tpu.memory_space<vmem>>, %arg8: memref<20x32xf32, #tpu.memory_space<vmem>>) attributes {dimension_semantics = [#tpu.dimension_semantics<parallel>, #tpu.dimension_semantics<parallel>, #tpu.dimension_semantics<arbitrary>], iteration_bounds = array<i64: 1, 1, 1>, scalar_prefetch = 0 : i64, scratch_operands = 1 : i64, tpu.core_type = #tpu.core_type<tc>, window_params = [{transform_indices = @transform_0, window_bounds = array<i64: 20, 32>}, {transform_indices = @transform_1, window_bounds = array<i64: 32, 32>}, {transform_indices = @transform_2, window_bounds = array<i64: 1, 32>}, {transform_indices = @transform_3, window_bounds = array<i64: 20, 32>}, {transform_indices = @transform_4, window_bounds = array<i64: 20, 32>}]} {
    %c0_i32 = arith.constant 0 : i32
    %0 = arith.cmpi eq, %arg2, %c0_i32 : i32
    %1 = arith.extui %0 : i1 to i32
    %c0_i32_0 = arith.constant 0 : i32
    %2 = arith.cmpi ne, %1, %c0_i32_0 : i32
    scf.if %2 {
      %cst_10 = arith.constant 0.000000e+00 : f32
      %12 = vector.broadcast %cst_10 : f32 to vector<20x32xf32>
      %c0_11 = arith.constant 0 : index
      %c0_12 = arith.constant 0 : index
      %13 = vector.load %arg8[%c0_11, %c0_12] : memref<20x32xf32, #tpu.memory_space<vmem>>, vector<20x32xf32>
      tpu.vector_store %arg8[%c0_11, %c0_12], %12 {strides = array<i32>} : memref<20x32xf32, #tpu.memory_space<vmem>>, vector<20x32xf32>,
    } else {
    }
    %c0 = arith.constant 0 : index
    %c0_1 = arith.constant 0 : index
    %3 = vector.load %arg8[%c0, %c0_1] : memref<20x32xf32, #tpu.memory_space<vmem>>, vector<20x32xf32>
    %c0_2 = arith.constant 0 : index
    %c0_3 = arith.constant 0 : index
    %4 = vector.load %arg3[%c0_2, %c0_3] : memref<20x32xbf16, #tpu.memory_space<vmem>>, vector<20x32xbf16>
    %c0_4 = arith.constant 0 : index
    %c0_5 = arith.constant 0 : index
    %5 = vector.load %arg4[%c0_4, %c0_5] : memref<32x32xbf16, #tpu.memory_space<vmem>>, vector<32x32xbf16>
    %cst = arith.constant dense<0.000000e+00> : vector<20x32xf32>
    %6 = tpu.matmul %4, %5, %cst {dimension_numbers = #tpu.dot_dimension_numbers<[1], [0], [0], [1], [0, 0, 1, 1], [], []>} : vector<20x32xbf16>, vector<32x32xbf16>, vector<20x32xf32> -> vector<20x32xf32>
    %7 = arith.addf %3, %6 : vector<20x32xf32>
    %c0_6 = arith.constant 0 : index
    %c0_7 = arith.constant 0 : index
    %8 = vector.load %arg8[%c0_6, %c0_7] : memref<20x32xf32, #tpu.memory_space<vmem>>, vector<20x32xf32>
    tpu.vector_store %arg8[%c0_6, %c0_7], %7 {strides = array<i32>} : memref<20x32xf32, #tpu.memory_space<vmem>>, vector<20x32xf32>,
    %c0_i32_8 = arith.constant 0 : i32
    %9 = arith.cmpi eq, %arg2, %c0_i32_8 : i32
    %10 = arith.extui %9 : i1 to i32
    %c0_i32_9 = arith.constant 0 : i32
    %11 = arith.cmpi ne, %10, %c0_i32_9 : i32
    scf.if %11 {
      %c0_10 = arith.constant 0 : index
      %c0_11 = arith.constant 0 : index
      %12 = vector.load %arg8[%c0_10, %c0_11] : memref<20x32xf32, #tpu.memory_space<vmem>>, vector<20x32xf32>
      %c0_12 = arith.constant 0 : index
      %c0_13 = arith.constant 0 : index
      %13 = vector.load %arg5[%c0_12, %c0_13] : memref<1x32xf32, #tpu.memory_space<vmem>>, vector<1x32xf32>
      %14 = vector.broadcast %13 : vector<1x32xf32> to vector<20x32xf32>
      %15 = arith.addf %12, %14 : vector<20x32xf32>
      %c0_14 = arith.constant 0 : index
      %c0_15 = arith.constant 0 : index
      %16 = vector.load %arg6[%c0_14, %c0_15] : memref<20x32xf32, #tpu.memory_space<vmem>>, vector<20x32xf32>
      %17 = arith.addf %15, %16 : vector<20x32xf32>
      %c0_16 = arith.constant 0 : index
      %c0_17 = arith.constant 0 : index
      %18 = vector.load %arg7[%c0_16, %c0_17] : memref<20x32xf32, #tpu.memory_space<vmem>>, vector<20x32xf32>
      tpu.vector_store %arg7[%c0_16, %c0_17], %17 {strides = array<i32>} : memref<20x32xf32, #tpu.memory_space<vmem>>, vector<20x32xf32>,
    } else {
    }
    return
  }
  func.func @transform_0(%arg0: i32, %arg1: i32, %arg2: i32) -> (i32, i32) {
    %c0_i32 = arith.constant 0 : i32
    return %arg0, %arg2 : i32, i32
  }
  func.func @transform_1(%arg0: i32, %arg1: i32, %arg2: i32) -> (i32, i32) {
    %c0_i32 = arith.constant 0 : i32
    return %arg2, %arg1 : i32, i32
  }
  func.func @transform_2(%arg0: i32, %arg1: i32, %arg2: i32) -> (i32, i32) {
    %c0_i32 = arith.constant 0 : i32
    %c0_i32_0 = arith.constant 0 : i32
    return %c0_i32, %arg1 : i32, i32
  }
  func.func @transform_3(%arg0: i32, %arg1: i32, %arg2: i32) -> (i32, i32) {
    %c0_i32 = arith.constant 0 : i32
    return %arg0, %arg1 : i32, i32
  }
  func.func @transform_4(%arg0: i32, %arg1: i32, %arg2: i32) -> (i32, i32) {
    %c0_i32 = arith.constant 0 : i32
    return %arg0, %arg1 : i32, i32
  }
}

module attributes {stable_mosaic.version = 11 : i64} {
  func.func @_linear_kernel(%arg0: i32, %arg1: i32, %arg2: i32, %arg3: memref<64x10xbf16, #tpu.memory_space<vmem>>, %arg4: memref<10x24xbf16, #tpu.memory_space<vmem>>, %arg5: memref<1x24xf32, #tpu.memory_space<vmem>>, %arg6: memref<64x24xf32, #tpu.memory_space<vmem>>, %arg7: memref<64x24xf32, #tpu.memory_space<vmem>>) attributes {dimension_semantics = [#tpu.dimension_semantics<parallel>, #tpu.dimension_semantics<parallel>, #tpu.dimension_semantics<arbitrary>], iteration_bounds = array<i64: 1, 1, 1>, scalar_prefetch = 0 : i64, scratch_operands = 1 : i64, tpu.core_type = #tpu.core_type<tc>, window_params = [{transform_indices = @transform_0, window_bounds = array<i64: 64, 10>}, {transform_indices = @transform_1, window_bounds = array<i64: 10, 24>}, {transform_indices = @transform_2, window_bounds = array<i64: 1, 24>}, {transform_indices = @transform_3, window_bounds = array<i64: 64, 24>}]} {
    %c0_i32 = arith.constant 0 : i32
    %0 = arith.cmpi eq, %arg2, %c0_i32 : i32
    %1 = arith.extui %0 : i1 to i32
    %c0_i32_0 = arith.constant 0 : i32
    %2 = arith.cmpi ne, %1, %c0_i32_0 : i32
    scf.if %2 {
      %cst_10 = arith.constant 0.000000e+00 : f32
      %12 = vector.broadcast %cst_10 : f32 to vector<64x24xf32>
      %c0_11 = arith.constant 0 : index
      %c0_12 = arith.constant 0 : index
      %13 = vector.load %arg7[%c0_11, %c0_12] : memref<64x24xf32, #tpu.memory_space<vmem>>, vector<64x24xf32>
      tpu.vector_store %arg7[%c0_11, %c0_12], %12 {strides = array<i32>} : memref<64x24xf32, #tpu.memory_space<vmem>>, vector<64x24xf32>,
    } else {
    }
    %c0 = arith.constant 0 : index
    %c0_1 = arith.constant 0 : index
    %3 = vector.load %arg7[%c0, %c0_1] : memref<64x24xf32, #tpu.memory_space<vmem>>, vector<64x24xf32>
    %c0_2 = arith.constant 0 : index
    %c0_3 = arith.constant 0 : index
    %4 = vector.load %arg3[%c0_2, %c0_3] : memref<64x10xbf16, #tpu.memory_space<vmem>>, vector<64x10xbf16>
    %c0_4 = arith.constant 0 : index
    %c0_5 = arith.constant 0 : index
    %5 = vector.load %arg4[%c0_4, %c0_5] : memref<10x24xbf16, #tpu.memory_space<vmem>>, vector<10x24xbf16>
    %cst = arith.constant dense<0.000000e+00> : vector<64x24xf32>
    %6 = tpu.matmul %4, %5, %cst {dimension_numbers = #tpu.dot_dimension_numbers<[1], [0], [0], [1], [0, 0, 1, 1], [], []>} : vector<64x10xbf16>, vector<10x24xbf16>, vector<64x24xf32> -> vector<64x24xf32>
    %7 = arith.addf %3, %6 : vector<64x24xf32>
    %c0_6 = arith.constant 0 : index
    %c0_7 = arith.constant 0 : index
    %8 = vector.load %arg7[%c0_6, %c0_7] : memref<64x24xf32, #tpu.memory_space<vmem>>, vector<64x24xf32>
    tpu.vector_store %arg7[%c0_6, %c0_7], %7 {strides = array<i32>} : memref<64x24xf32, #tpu.memory_space<vmem>>, vector<64x24xf32>,
    %c0_i32_8 = arith.constant 0 : i32
    %9 = arith.cmpi eq, %arg2, %c0_i32_8 : i32
    %10 = arith.extui %9 : i1 to i32
    %c0_i32_9 = arith.constant 0 : i32
    %11 = arith.cmpi ne, %10, %c0_i32_9 : i32
    scf.if %11 {
      %c0_10 = arith.constant 0 : index
      %c0_11 = arith.constant 0 : index
      %12 = vector.load %arg7[%c0_10, %c0_11] : memref<64x24xf32, #tpu.memory_space<vmem>>, vector<64x24xf32>
      %c0_12 = arith.constant 0 : index
      %c0_13 = arith.constant 0 : index
      %13 = vector.load %arg5[%c0_12, %c0_13] : memref<1x24xf32, #tpu.memory_space<vmem>>, vector<1x24xf32>
      %14 = vector.broadcast %13 : vector<1x24xf32> to vector<64x24xf32>
      %15 = arith.addf %12, %14 : vector<64x24xf32>
      %c0_14 = arith.constant 0 : index
      %c0_15 = arith.constant 0 : index
      %16 = vector.load %arg6[%c0_14, %c0_15] : memref<64x24xf32, #tpu.memory_space<vmem>>, vector<64x24xf32>
      tpu.vector_store %arg6[%c0_14, %c0_15], %15 {strides = array<i32>} : memref<64x24xf32, #tpu.memory_space<vmem>>, vector<64x24xf32>,
    } else {
    }
    return
  }
  func.func @transform_0(%arg0: i32, %arg1: i32, %arg2: i32) -> (i32, i32) {
    %c0_i32 = arith.constant 0 : i32
    return %arg0, %arg2 : i32, i32
  }
  func.func @transform_1(%arg0: i32, %arg1: i32, %arg2: i32) -> (i32, i32) {
    %c0_i32 = arith.constant 0 : i32
    return %arg2, %arg1 : i32, i32
  }
  func.func @transform_2(%arg0: i32, %arg1: i32, %arg2: i32) -> (i32, i32) {
    %c0_i32 = arith.constant 0 : i32
    %c0_i32_0 = arith.constant 0 : i32
    return %c0_i32, %arg1 : i32, i32
  }
  func.func @transform_3(%arg0: i32, %arg1: i32, %arg2: i32) -> (i32, i32) {
    %c0_i32 = arith.constant 0 : i32
    return %arg0, %arg1 : i32, i32
  }
}

module attributes {stable_mosaic.version = 11 : i64} {
  func.func @_linear_kernel(%arg0: i32, %arg1: i32, %arg2: i32, %arg3: memref<64x8xbf16, #tpu.memory_space<vmem>>, %arg4: memref<8x10xbf16, #tpu.memory_space<vmem>>, %arg5: memref<1x10xf32, #tpu.memory_space<vmem>>, %arg6: memref<64x10xf32, #tpu.memory_space<vmem>>, %arg7: memref<64x10xf32, #tpu.memory_space<vmem>>, %arg8: memref<64x10xf32, #tpu.memory_space<vmem>>) attributes {dimension_semantics = [#tpu.dimension_semantics<parallel>, #tpu.dimension_semantics<parallel>, #tpu.dimension_semantics<arbitrary>], iteration_bounds = array<i64: 1, 1, 1>, scalar_prefetch = 0 : i64, scratch_operands = 1 : i64, tpu.core_type = #tpu.core_type<tc>, window_params = [{transform_indices = @transform_0, window_bounds = array<i64: 64, 8>}, {transform_indices = @transform_1, window_bounds = array<i64: 8, 10>}, {transform_indices = @transform_2, window_bounds = array<i64: 1, 10>}, {transform_indices = @transform_3, window_bounds = array<i64: 64, 10>}, {transform_indices = @transform_4, window_bounds = array<i64: 64, 10>}]} {
    %c0_i32 = arith.constant 0 : i32
    %0 = arith.cmpi eq, %arg2, %c0_i32 : i32
    %1 = arith.extui %0 : i1 to i32
    %c0_i32_0 = arith.constant 0 : i32
    %2 = arith.cmpi ne, %1, %c0_i32_0 : i32
    scf.if %2 {
      %cst_10 = arith.constant 0.000000e+00 : f32
      %12 = vector.broadcast %cst_10 : f32 to vector<64x10xf32>
      %c0_11 = arith.constant 0 : index
      %c0_12 = arith.constant 0 : index
      %13 = vector.load %arg8[%c0_11, %c0_12] : memref<64x10xf32, #tpu.memory_space<vmem>>, vector<64x10xf32>
      tpu.vector_store %arg8[%c0_11, %c0_12], %12 {strides = array<i32>} : memref<64x10xf32, #tpu.memory_space<vmem>>, vector<64x10xf32>,
    } else {
    }
    %c0 = arith.constant 0 : index
    %c0_1 = arith.constant 0 : index
    %3 = vector.load %arg8[%c0, %c0_1] : memref<64x10xf32, #tpu.memory_space<vmem>>, vector<64x10xf32>
    %c0_2 = arith.constant 0 : index
    %c0_3 = arith.constant 0 : index
    %4 = vector.load %arg3[%c0_2, %c0_3] : memref<64x8xbf16, #tpu.memory_space<vmem>>, vector<64x8xbf16>
    %c0_4 = arith.constant 0 : index
    %c0_5 = arith.constant 0 : index
    %5 = vector.load %arg4[%c0_4, %c0_5] : memref<8x10xbf16, #tpu.memory_space<vmem>>, vector<8x10xbf16>
    %cst = arith.constant dense<0.000000e+00> : vector<64x10xf32>
    %6 = tpu.matmul %4, %5, %cst {dimension_numbers = #tpu.dot_dimension_numbers<[1], [0], [0], [1], [0, 0, 1, 1], [], []>} : vector<64x8xbf16>, vector<8x10xbf16>, vector<64x10xf32> -> vector<64x10xf32>
    %7 = arith.addf %3, %6 : vector<64x10xf32>
    %c0_6 = arith.constant 0 : index
    %c0_7 = arith.constant 0 : index
    %8 = vector.load %arg8[%c0_6, %c0_7] : memref<64x10xf32, #tpu.memory_space<vmem>>, vector<64x10xf32>
    tpu.vector_store %arg8[%c0_6, %c0_7], %7 {strides = array<i32>} : memref<64x10xf32, #tpu.memory_space<vmem>>, vector<64x10xf32>,
    %c0_i32_8 = arith.constant 0 : i32
    %9 = arith.cmpi eq, %arg2, %c0_i32_8 : i32
    %10 = arith.extui %9 : i1 to i32
    %c0_i32_9 = arith.constant 0 : i32
    %11 = arith.cmpi ne, %10, %c0_i32_9 : i32
    scf.if %11 {
      %c0_10 = arith.constant 0 : index
      %c0_11 = arith.constant 0 : index
      %12 = vector.load %arg8[%c0_10, %c0_11] : memref<64x10xf32, #tpu.memory_space<vmem>>, vector<64x10xf32>
      %c0_12 = arith.constant 0 : index
      %c0_13 = arith.constant 0 : index
      %13 = vector.load %arg5[%c0_12, %c0_13] : memref<1x10xf32, #tpu.memory_space<vmem>>, vector<1x10xf32>
      %14 = vector.broadcast %13 : vector<1x10xf32> to vector<64x10xf32>
      %15 = arith.addf %12, %14 : vector<64x10xf32>
      %c0_14 = arith.constant 0 : index
      %c0_15 = arith.constant 0 : index
      %16 = vector.load %arg6[%c0_14, %c0_15] : memref<64x10xf32, #tpu.memory_space<vmem>>, vector<64x10xf32>
      %17 = arith.addf %15, %16 : vector<64x10xf32>
      %c0_16 = arith.constant 0 : index
      %c0_17 = arith.constant 0 : index
      %18 = vector.load %arg7[%c0_16, %c0_17] : memref<64x10xf32, #tpu.memory_space<vmem>>, vector<64x10xf32>
      tpu.vector_store %arg7[%c0_16, %c0_17], %17 {strides = array<i32>} : memref<64x10xf32, #tpu.memory_space<vmem>>, vector<64x10xf32>,
    } else {
    }
    return
  }
  func.func @transform_0(%arg0: i32, %arg1: i32, %arg2: i32) -> (i32, i32) {
    %c0_i32 = arith.constant 0 : i32
    return %arg0, %arg2 : i32, i32
  }
  func.func @transform_1(%arg0: i32, %arg1: i32, %arg2: i32) -> (i32, i32) {
    %c0_i32 = arith.constant 0 : i32
    return %arg2, %arg1 : i32, i32
  }
  func.func @transform_2(%arg0: i32, %arg1: i32, %arg2: i32) -> (i32, i32) {
    %c0_i32 = arith.constant 0 : i32
    %c0_i32_0 = arith.constant 0 : i32
    return %c0_i32, %arg1 : i32, i32
  }
  func.func @transform_3(%arg0: i32, %arg1: i32, %arg2: i32) -> (i32, i32) {
    %c0_i32 = arith.constant 0 : i32
    return %arg0, %arg1 : i32, i32
  }
  func.func @transform_4(%arg0: i32, %arg1: i32, %arg2: i32) -> (i32, i32) {
    %c0_i32 = arith.constant 0 : i32
    return %arg0, %arg1 : i32, i32
  }
}

module attributes {stable_mosaic.version = 11 : i64} {
  func.func @_layernorm_kernel(%arg0: memref<20x32xf32, #tpu.memory_space<vmem>>, %arg1: memref<1x32xf32, #tpu.memory_space<vmem>>, %arg2: memref<1x32xf32, #tpu.memory_space<vmem>>, %arg3: memref<20x32xf32, #tpu.memory_space<vmem>>) attributes {dimension_semantics = [], scalar_prefetch = 0 : i64, scratch_operands = 0 : i64, tpu.core_type = #tpu.core_type<tc>} {
    %c0 = arith.constant 0 : index
    %c0_0 = arith.constant 0 : index
    %0 = vector.load %arg0[%c0, %c0_0] : memref<20x32xf32, #tpu.memory_space<vmem>>, vector<20x32xf32>
    %cst = arith.constant dense<0.000000e+00> : vector<20xf32>
    %1 = vector.multi_reduction <add>, %0, %cst [1] : vector<20x32xf32> to vector<20xf32>
    %2 = vector.shape_cast %1 : vector<20xf32> to vector<20x1xf32>
    %cst_1 = arith.constant 3.200000e+01 : f32
    %3 = vector.broadcast %cst_1 : f32 to vector<20x1xf32>
    %4 = arith.divf %2, %3 : vector<20x1xf32>
    %5 = vector.broadcast %4 : vector<20x1xf32> to vector<20x32xf32>
    %6 = arith.subf %0, %5 : vector<20x32xf32>
    %7 = arith.mulf %6, %6 : vector<20x32xf32>
    %cst_2 = arith.constant dense<0.000000e+00> : vector<20xf32>
    %8 = vector.multi_reduction <add>, %7, %cst_2 [1] : vector<20x32xf32> to vector<20xf32>
    %9 = vector.shape_cast %8 : vector<20xf32> to vector<20x1xf32>
    %cst_3 = arith.constant 3.200000e+01 : f32
    %10 = vector.broadcast %cst_3 : f32 to vector<20x1xf32>
    %11 = arith.divf %9, %10 : vector<20x1xf32>
    %cst_4 = arith.constant 9.99999974E-6 : f32
    %12 = vector.broadcast %cst_4 : f32 to vector<20x1xf32>
    %13 = arith.addf %11, %12 : vector<20x1xf32>
    %14 = math.rsqrt %13 : vector<20x1xf32>
    %15 = vector.broadcast %14 : vector<20x1xf32> to vector<20x32xf32>
    %16 = arith.mulf %6, %15 : vector<20x32xf32>
    %c0_5 = arith.constant 0 : index
    %c0_6 = arith.constant 0 : index
    %17 = vector.load %arg1[%c0_5, %c0_6] : memref<1x32xf32, #tpu.memory_space<vmem>>, vector<1x32xf32>
    %18 = vector.broadcast %17 : vector<1x32xf32> to vector<20x32xf32>
    %19 = arith.mulf %16, %18 : vector<20x32xf32>
    %c0_7 = arith.constant 0 : index
    %c0_8 = arith.constant 0 : index
    %20 = vector.load %arg2[%c0_7, %c0_8] : memref<1x32xf32, #tpu.memory_space<vmem>>, vector<1x32xf32>
    %21 = vector.broadcast %20 : vector<1x32xf32> to vector<20x32xf32>
    %22 = arith.addf %19, %21 : vector<20x32xf32>
    %c0_9 = arith.constant 0 : index
    %c0_10 = arith.constant 0 : index
    %23 = vector.load %arg3[%c0_9, %c0_10] : memref<20x32xf32, #tpu.memory_space<vmem>>, vector<20x32xf32>
    tpu.vector_store %arg3[%c0_9, %c0_10], %22 {strides = array<i32>} : memref<20x32xf32, #tpu.memory_space<vmem>>, vector<20x32xf32>,
    return
  }
}

module attributes {stable_mosaic.version = 11 : i64} {
  func.func @_ffn_kernel(%arg0: i32, %arg1: memref<20x32xbf16, #tpu.memory_space<vmem>>, %arg2: memref<32x64xbf16, #tpu.memory_space<vmem>>, %arg3: memref<64x32xbf16, #tpu.memory_space<vmem>>, %arg4: memref<20x32xf32, #tpu.memory_space<vmem>>, %arg5: memref<20x32xf32, #tpu.memory_space<vmem>>) attributes {dimension_semantics = [#tpu.dimension_semantics<parallel>], iteration_bounds = array<i64: 1>, scalar_prefetch = 0 : i64, scratch_operands = 0 : i64, tpu.core_type = #tpu.core_type<tc>, window_params = [{transform_indices = @transform_0, window_bounds = array<i64: 20, 32>}, {pipeline_mode = #tpu.pipeline_mode<synchronous>, transform_indices = @transform_1, window_bounds = array<i64: 32, 64>}, {pipeline_mode = #tpu.pipeline_mode<synchronous>, transform_indices = @transform_2, window_bounds = array<i64: 64, 32>}, {transform_indices = @transform_3, window_bounds = array<i64: 20, 32>}, {transform_indices = @transform_4, window_bounds = array<i64: 20, 32>}]} {
    %c0 = arith.constant 0 : index
    %c0_0 = arith.constant 0 : index
    %0 = vector.load %arg1[%c0, %c0_0] : memref<20x32xbf16, #tpu.memory_space<vmem>>, vector<20x32xbf16>
    %c0_1 = arith.constant 0 : index
    %c0_2 = arith.constant 0 : index
    %1 = vector.load %arg2[%c0_1, %c0_2] : memref<32x64xbf16, #tpu.memory_space<vmem>>, vector<32x64xbf16>
    %cst = arith.constant dense<0.000000e+00> : vector<20x64xf32>
    %2 = tpu.matmul %0, %1, %cst {dimension_numbers = #tpu.dot_dimension_numbers<[1], [0], [0], [1], [0, 0, 1, 1], [], []>} : vector<20x32xbf16>, vector<32x64xbf16>, vector<20x64xf32> -> vector<20x64xf32>
    %cst_3 = arith.constant 5.000000e-01 : f32
    %3 = vector.broadcast %cst_3 : f32 to vector<20x64xf32>
    %4 = arith.mulf %3, %2 : vector<20x64xf32>
    %cst_4 = arith.constant 4.471500e-02 : f32
    %5 = vector.broadcast %cst_4 : f32 to vector<20x64xf32>
    %6 = arith.mulf %5, %2 : vector<20x64xf32>
    %7 = arith.mulf %6, %2 : vector<20x64xf32>
    %8 = arith.mulf %7, %2 : vector<20x64xf32>
    %9 = arith.addf %2, %8 : vector<20x64xf32>
    %cst_5 = arith.constant 0.797884583 : f32
    %10 = vector.broadcast %cst_5 : f32 to vector<20x64xf32>
    %11 = arith.mulf %10, %9 : vector<20x64xf32>
    %12 = math.tanh %11 : vector<20x64xf32>
    %cst_6 = arith.constant 1.000000e+00 : f32
    %13 = vector.broadcast %cst_6 : f32 to vector<20x64xf32>
    %14 = arith.addf %13, %12 : vector<20x64xf32>
    %15 = arith.mulf %4, %14 : vector<20x64xf32>
    %16 = arith.truncf %15 : vector<20x64xf32> to vector<20x64xbf16>
    %c0_7 = arith.constant 0 : index
    %c0_8 = arith.constant 0 : index
    %17 = vector.load %arg3[%c0_7, %c0_8] : memref<64x32xbf16, #tpu.memory_space<vmem>>, vector<64x32xbf16>
    %cst_9 = arith.constant dense<0.000000e+00> : vector<20x32xf32>
    %18 = tpu.matmul %16, %17, %cst_9 {dimension_numbers = #tpu.dot_dimension_numbers<[1], [0], [0], [1], [0, 0, 1, 1], [], []>} : vector<20x64xbf16>, vector<64x32xbf16>, vector<20x32xf32> -> vector<20x32xf32>
    %c0_10 = arith.constant 0 : index
    %c0_11 = arith.constant 0 : index
    %19 = vector.load %arg4[%c0_10, %c0_11] : memref<20x32xf32, #tpu.memory_space<vmem>>, vector<20x32xf32>
    %20 = arith.addf %19, %18 : vector<20x32xf32>
    %c0_12 = arith.constant 0 : index
    %c0_13 = arith.constant 0 : index
    %21 = vector.load %arg5[%c0_12, %c0_13] : memref<20x32xf32, #tpu.memory_space<vmem>>, vector<20x32xf32>
    tpu.vector_store %arg5[%c0_12, %c0_13], %20 {strides = array<i32>} : memref<20x32xf32, #tpu.memory_space<vmem>>, vector<20x32xf32>,
    return
  }
  func.func @transform_0(%arg0: i32) -> (i32, i32) {
    %c0_i32 = arith.constant 0 : i32
    %c0_i32_0 = arith.constant 0 : i32
    return %arg0, %c0_i32 : i32, i32
  }
  func.func @transform_1(%arg0: i32) -> (i32, i32) {
    %c0_i32 = arith.constant 0 : i32
    %c0_i32_0 = arith.constant 0 : i32
    %c0_i32_1 = arith.constant 0 : i32
    return %c0_i32, %c0_i32_0 : i32, i32
  }
  func.func @transform_2(%arg0: i32) -> (i32, i32) {
    %c0_i32 = arith.constant 0 : i32
    %c0_i32_0 = arith.constant 0 : i32
    %c0_i32_1 = arith.constant 0 : i32
    return %c0_i32, %c0_i32_0 : i32, i32
  }
  func.func @transform_3(%arg0: i32) -> (i32, i32) {
    %c0_i32 = arith.constant 0 : i32
    %c0_i32_0 = arith.constant 0 : i32
    return %arg0, %c0_i32 : i32, i32
  }
  func.func @transform_4(%arg0: i32) -> (i32, i32) {
    %c0_i32 = arith.constant 0 : i32
    %c0_i32_0 = arith.constant 0 : i32
    return %arg0, %c0_i32 : i32, i32
  }
}

module attributes {stable_mosaic.version = 11 : i64} {
  func.func @_linear_kernel(%arg0: i32, %arg1: i32, %arg2: i32, %arg3: memref<20x64xbf16, #tpu.memory_space<vmem>>, %arg4: memref<64x8xbf16, #tpu.memory_space<vmem>>, %arg5: memref<1x8xf32, #tpu.memory_space<vmem>>, %arg6: memref<20x8xf32, #tpu.memory_space<vmem>>, %arg7: memref<20x8xf32, #tpu.memory_space<vmem>>) attributes {dimension_semantics = [#tpu.dimension_semantics<parallel>, #tpu.dimension_semantics<parallel>, #tpu.dimension_semantics<arbitrary>], iteration_bounds = array<i64: 1, 1, 1>, scalar_prefetch = 0 : i64, scratch_operands = 1 : i64, tpu.core_type = #tpu.core_type<tc>, window_params = [{transform_indices = @transform_0, window_bounds = array<i64: 20, 64>}, {transform_indices = @transform_1, window_bounds = array<i64: 64, 8>}, {transform_indices = @transform_2, window_bounds = array<i64: 1, 8>}, {transform_indices = @transform_3, window_bounds = array<i64: 20, 8>}]} {
    %c0_i32 = arith.constant 0 : i32
    %0 = arith.cmpi eq, %arg2, %c0_i32 : i32
    %1 = arith.extui %0 : i1 to i32
    %c0_i32_0 = arith.constant 0 : i32
    %2 = arith.cmpi ne, %1, %c0_i32_0 : i32
    scf.if %2 {
      %cst_10 = arith.constant 0.000000e+00 : f32
      %12 = vector.broadcast %cst_10 : f32 to vector<20x8xf32>
      %c0_11 = arith.constant 0 : index
      %c0_12 = arith.constant 0 : index
      %13 = vector.load %arg7[%c0_11, %c0_12] : memref<20x8xf32, #tpu.memory_space<vmem>>, vector<20x8xf32>
      tpu.vector_store %arg7[%c0_11, %c0_12], %12 {strides = array<i32>} : memref<20x8xf32, #tpu.memory_space<vmem>>, vector<20x8xf32>,
    } else {
    }
    %c0 = arith.constant 0 : index
    %c0_1 = arith.constant 0 : index
    %3 = vector.load %arg7[%c0, %c0_1] : memref<20x8xf32, #tpu.memory_space<vmem>>, vector<20x8xf32>
    %c0_2 = arith.constant 0 : index
    %c0_3 = arith.constant 0 : index
    %4 = vector.load %arg3[%c0_2, %c0_3] : memref<20x64xbf16, #tpu.memory_space<vmem>>, vector<20x64xbf16>
    %c0_4 = arith.constant 0 : index
    %c0_5 = arith.constant 0 : index
    %5 = vector.load %arg4[%c0_4, %c0_5] : memref<64x8xbf16, #tpu.memory_space<vmem>>, vector<64x8xbf16>
    %cst = arith.constant dense<0.000000e+00> : vector<20x8xf32>
    %6 = tpu.matmul %4, %5, %cst {dimension_numbers = #tpu.dot_dimension_numbers<[1], [0], [0], [1], [0, 0, 1, 1], [], []>} : vector<20x64xbf16>, vector<64x8xbf16>, vector<20x8xf32> -> vector<20x8xf32>
    %7 = arith.addf %3, %6 : vector<20x8xf32>
    %c0_6 = arith.constant 0 : index
    %c0_7 = arith.constant 0 : index
    %8 = vector.load %arg7[%c0_6, %c0_7] : memref<20x8xf32, #tpu.memory_space<vmem>>, vector<20x8xf32>
    tpu.vector_store %arg7[%c0_6, %c0_7], %7 {strides = array<i32>} : memref<20x8xf32, #tpu.memory_space<vmem>>, vector<20x8xf32>,
    %c0_i32_8 = arith.constant 0 : i32
    %9 = arith.cmpi eq, %arg2, %c0_i32_8 : i32
    %10 = arith.extui %9 : i1 to i32
    %c0_i32_9 = arith.constant 0 : i32
    %11 = arith.cmpi ne, %10, %c0_i32_9 : i32
    scf.if %11 {
      %c0_10 = arith.constant 0 : index
      %c0_11 = arith.constant 0 : index
      %12 = vector.load %arg7[%c0_10, %c0_11] : memref<20x8xf32, #tpu.memory_space<vmem>>, vector<20x8xf32>
      %c0_12 = arith.constant 0 : index
      %c0_13 = arith.constant 0 : index
      %13 = vector.load %arg5[%c0_12, %c0_13] : memref<1x8xf32, #tpu.memory_space<vmem>>, vector<1x8xf32>
      %14 = vector.broadcast %13 : vector<1x8xf32> to vector<20x8xf32>
      %15 = arith.addf %12, %14 : vector<20x8xf32>
      %c0_14 = arith.constant 0 : index
      %c0_15 = arith.constant 0 : index
      %16 = vector.load %arg6[%c0_14, %c0_15] : memref<20x8xf32, #tpu.memory_space<vmem>>, vector<20x8xf32>
      tpu.vector_store %arg6[%c0_14, %c0_15], %15 {strides = array<i32>} : memref<20x8xf32, #tpu.memory_space<vmem>>, vector<20x8xf32>,
    } else {
    }
    return
  }
  func.func @transform_0(%arg0: i32, %arg1: i32, %arg2: i32) -> (i32, i32) {
    %c0_i32 = arith.constant 0 : i32
    return %arg0, %arg2 : i32, i32
  }
  func.func @transform_1(%arg0: i32, %arg1: i32, %arg2: i32) -> (i32, i32) {
    %c0_i32 = arith.constant 0 : i32
    return %arg2, %arg1 : i32, i32
  }
  func.func @transform_2(%arg0: i32, %arg1: i32, %arg2: i32) -> (i32, i32) {
    %c0_i32 = arith.constant 0 : i32
    %c0_i32_0 = arith.constant 0 : i32
    return %c0_i32, %arg1 : i32, i32
  }
  func.func @transform_3(%arg0: i32, %arg1: i32, %arg2: i32) -> (i32, i32) {
    %c0_i32 = arith.constant 0 : i32
    return %arg0, %arg1 : i32, i32
  }
}

</mosaic_0001>

<bundles_post_ra>
// kernel: _lambda_.13
= control target key start
LH: loop header
LB: loop body
LE: loop exit
PB: predicated region body
PF: predicated region fallthrough
CT: control target
= control target key end

     0   :  { %s770_s30 = smov 0   ;;  %s848_s0 = inlined_call_operand.vmem [shape: f32[2,10,16], index: 0, kind: input, shape index: {}]   ;;  %s849_s1 = inlined_call_operand.vmem [shape: bf16[16,32], index: 1, kind: input, shape index: {}]   ;;  %s850_s2 = inlined_call_operand.vmem [shape: f32[1,32], index: 2, kind: input, shape index: {}]   ;;  %s851_s3 = inlined_call_operand.vmem [shape: f32[10,1], index: 3, kind: input, shape index: {}]   ;;  %s852_s4 = inlined_call_operand.vmem [shape: f32[10,1], index: 4, kind: input, shape index: {}]   ;;  %s853_s5 = inlined_call_operand.vmem [shape: f32[10,1], index: 5, kind: input, shape index: {}]   ;;  %s854_s6 = inlined_call_operand.vmem [shape: f32[10,32], index: 6, kind: input, shape index: {}]   ;;  %s855_s7 = inlined_call_operand.vmem [shape: f32[2,10,32], index: 7, kind: output, shape index: {0}]   ;;  %s856_s8 = inlined_call_operand.vmem [shape: f32[2,10,1], index: 8, kind: output, shape index: {1}]   ;;  %s857_s9 = inlined_call_operand.vmem [shape: f32[2,10,1], index: 9, kind: output, shape index: {2}]  }
   0x1 LB: > { %s657_s10 = sadd.s32 4294967295, %s715_s30   ;;  %p661_p0 = scmp.ge.s32.totalorder %s715_s30, 1  ;;  %s715_s30 = sphi %s770_s30, %s20_s30  }
   0x2   : > { %p292_p1 = scmp.lt.s32.totalorder %s715_s30, 3 }
   0x4   : > { %p293_p2 = pnand %p661_p0, %p292_p1 }
   0x5   : > { %p338_p3 = scmp.lt.s32.totalorder (!%p293_p2), %s657_s10, 1  ;;  %v405_v0 = vld [vmem:[%s851_s3 + $0x8] sm:$0x3] (!%p293_p2)  ;;  %v717_v1 = vmov (!%p293_p2), 0   ;;  %v418_v2 = vld [vmem:[%s852_s4] sm:$0xff] (!%p293_p2)  ;;  %vm361_vm0 = vcmask (!%p293_p2), 130048  }
   0x6   : > { %296 = sbr.rel (%p293_p2) target bundleno = 574 (0x23e), region = 48  ;;  %699 = vset.pattern.permute.xlu1 (!%p293_p2), %v717_v1  ;;  %698 = vset.pattern.permute.xlu0 (!%p293_p2), %v717_v1  ;;  %vm365_vm1 = vcmask (!%p293_p2), 123904   ;;  %v419_v6 = vld [vmem:[%s852_s4 + $0x8] sm:$0x3] (!%p293_p2)  ;;  %v432_v8 = vld [vmem:[%s853_s5] sm:$0xff] (!%p293_p2)  ;;  %vm530_vm2 = vcmask (!%p293_p2), 7168  }
   0x7   : > { %413 = vperm.xlu1 (!%p293_p2), %699, %v405_v0   ;;  %v404_v9 = vld [vmem:[%s851_s3] sm:$0xff] (!%p293_p2)  ;;  %vm532_vm3 = vcmask (!%p293_p2), 1024   ;;  %v433_v20 = vld [vmem:[%s853_s5 + $0x8] sm:$0x3] (!%p293_p2)  ;;  %v446_v21 = vsub.f32 (!%p293_p2), 1.0, %v432_v8  ;;  %v718_v24 = vmov (!%p293_p2), 0.0  }
   0x8   : > { %v447_v22 = vsub.f32 (!%p293_p2), 1.0, %v433_v20  ;;  %v700_v23 = vld [vmem:[%s849_s1] sm:$0xff] (!%p293_p2)   ;;  %681 = vmatprep.subr.bf16.mxu0 (!%p293_p2), %v718_v24  ;;  %vm719_vm4 = vmmov (!%p293_p2), 0   ;;  %vm526_vm9 = vcmask (!%p293_p2), 261120   ;;  %vm528_vm10 = vcmask (!%p293_p2), 254976  }
   0x9   : > { %683 = vmatprep.mubr.msk.bf16.mxu0 (!%p293_p2), %vm719_vm4, %v718_v24  ;;  %682 = vmatpush3.bf16.msra.mxu0 (!%p293_p2), %v700_v23  ;;  %v670_v0 = vld [vmem:[%s850_s2] ss:$0 sm:$0xff] (!%p293_p2) }
   0xb   : > { %422 = vperm.xlu1 (!%p293_p2), %699, %v418_v2   ;;  %v522_v2 = vld [vmem:[%s854_s6] sm:$0xff] (!%p293_p2) }
   0xd   : > { %s859_s10 = smov (!%p338_p3, %s657_s10), 1 }
   0xe   : > { %s784_s15 = sshll.u32 %s859_s10, 4 }
   0xf   : > { %s342_s18 = scalar_lea.vmem %s848_s0, %s784_s15  ;;  %427 = vperm.xlu1 %699, %v419_v6   ;;  %s352_s27 = scalar_lea.vmem %s856_s8, %s784_s15 }
  0x10   : > { %v790_v3 = vld [vmem:[%s342_s18] sm:$0xff]  ;;  %v792_v4 = vld [vmem:[%s342_s18 + $0x8] sm:$0x3]  ;;  %s357_s14 = scalar_lea.vmem %s857_s9, %s784_s15  ;;  %s347_s22 = scalar_lea.vmem %s855_s7, %s784_s15 }
  0x11   : > { %v362_v5 = vsel %vm361_vm0, %v790_v3, 0.0  ;;  %v366_v7 = vsel %vm365_vm1, %v792_v4, 0.0 }
  0x12   : > { %363 = vadd.xlane.f32.xlu0 %v362_v5 }
  0x13   : > { %436 = vperm.xlu1 %699, %v432_v8  }
  0x16   : > { %367 = vadd.xlane.f32.xlu0 %v366_v7 }
  0x2c   : > { %408 = vperm.xlu0 %698, %v404_v9  }
  0x86   : > { %v414_v25 = vpop.permute.xlu1 %413 }
  0x8a   : > { %v423_v26 = vpop.permute.xlu1 %422 }
  0x8e   : > { %v428_v27 = vpop.permute.xlu1 %427 }
  0x92   : > { %v437_v28 = vpop.permute.xlu1 %436 }
  0x9f   : > { %v364_v10 = vpop.xlane.xlu0 %363 }
  0xa0   : > { %v370_v11 = vmul.f32 0.0625, %v364_v10 }
  0xa2   : > { %v372_v12 = vsub.f32 %v790_v3, %v370_v11  ;;  %531 = vst.msk [vmem:[%s352_s27] sm:$0xff] %vm530_vm2, %v370_v11 }
  0xa3   : > { %v368_v13 = vpop.xlane.xlu0 %367 }
  0xa4   : > { %v371_v14 = vmul.f32 0.0625, %v368_v13  ;;  %v374_v15 = vmul.f32 %v372_v12, %v372_v12 }
  0xa6   : > { %v373_v16 = vsub.f32 %v792_v4, %v371_v14  ;;  %533 = vst.msk [vmem:[%s352_s27 + $0x8] sm:$0x3] %vm532_vm3, %v371_v14  ;;  %v376_v17 = vsel %vm361_vm0, %v374_v15, 0.0 }
  0xa7   : > { %377 = vadd.xlane.f32.xlu1 %v376_v17 }
  0xa8   : > { %v375_v18 = vmul.f32 %v373_v16, %v373_v16 }
  0xaa   : > { %v379_v19 = vsel %vm365_vm1, %v375_v18, 0.0 }
  0xab   : > { %380 = vadd.xlane.f32.xlu1 %v379_v19  ;;  %v409_v47 = vpop.permute.xlu0 %408 }
  0xbc   : > { %441 = vperm.xlu1 %699, %v433_v20  }
  0xc0   : > { %450 = vperm.xlu1 %699, %v446_v21  }
  0xc4   : > { %455 = vperm.xlu1 %699, %v447_v22  }
 0x134   : > { %v378_v29 = vpop.xlane.xlu1 %377 }
 0x135   : > { %v382_v30 = vmul.f32 0.0625, %v378_v29 }
 0x137   : > { %v384_v31 = vadd.f32 1e-05, %v382_v30 }
 0x138   : > { %v381_v32 = vpop.xlane.xlu1 %380 }
 0x139   : > { %701 = vrsqrt.f32 %v384_v31  ;;  %v383_v33 = vmul.f32 0.0625, %v381_v32  ;;  %vm388_vm5 = vcmp.eq.f32.partialorder %v384_v31, inf  ;;  %v391_v37 = vand.u32 2147483648, %v384_v31 }
 0x13a   : > { %vm390_vm6 = vcmp.eq.f32.partialorder %v384_v31, 0.0 }
 0x13b   : > { %v385_v34 = vadd.f32 1e-05, %v383_v33 }
 0x13c   : > { %v442_v45 = vpop.permute.xlu1 %441 }
 0x13d   : > { %703 = vrsqrt.f32 %v385_v34  ;;  %vm395_vm7 = vcmp.eq.f32.partialorder %v385_v34, inf  ;;  %v398_v42 = vand.u32 2147483648, %v385_v34  ;;  %vm397_vm8 = vcmp.eq.f32.partialorder %v385_v34, 0.0 }
 0x140   : > { %v451_v49 = vpop.permute.xlu1 %450 }
 0x141   : > { %v458_v59 = vmul.f32 %v451_v49, %v790_v3 }
 0x143   : > { %v702_v35 = vpop.eup %701 }
 0x144   : > { %v387_v36 = vmul.f32 %v702_v35, %v384_v31  ;;  %v456_v55 = vpop.permute.xlu1 %455 }
 0x145   : > { %v459_v60 = vmul.f32 %v456_v55, %v792_v4  ;;  %v523_v4 = vld [vmem:[%s854_s6 + $0x8] sm:$0x3] }
 0x146   : > { %v389_v38 = vsel %vm388_vm5, %v384_v31, %v387_v36 }
 0x147   : > { %v704_v39 = vpop.eup %703  ;;  %v392_v40 = vsel %vm390_vm6, %v391_v37, %v389_v38 }
 0x148   : > { %v394_v41 = vmul.f32 %v704_v39, %v385_v34  ;;  %705 = vrcp.f32 %v392_v40  ;;  %534 = vst.msk [vmem:[%s357_s14] sm:$0xff] %vm530_vm2, %v392_v40 }
 0x14a   : > { %v396_v43 = vsel %vm395_vm7, %v385_v34, %v394_v41 }
 0x14b   : > { %v399_v44 = vsel %vm397_vm8, %v398_v42, %v396_v43 }
 0x14c   : > { %707 = vrcp.f32 %v399_v44  ;;  %535 = vst.msk [vmem:[%s357_s14 + $0x8] sm:$0x3] %vm532_vm3, %v399_v44 }
 0x152   : > { %v706_v46 = vpop.eup %705 }
 0x153   : > { %v401_v48 = vmul.f32 %v706_v46, %v372_v12 }
 0x155   : > { %v416_v50 = vmul.f32 %v409_v47, %v401_v48 }
 0x156   : > { %v708_v51 = vpop.eup %707 }
 0x157   : > { %v403_v52 = vmul.f32 %v708_v51, %v373_v16  ;;  %v430_v53 = vadd.f32 %v423_v26, %v416_v50 }
 0x159   : > { %v417_v54 = vmul.f32 %v414_v25, %v403_v52  ;;  %v444_v57 = vmul.f32 %v437_v28, %v430_v53 }
 0x15b   : > { %v431_v56 = vadd.f32 %v428_v27, %v417_v54  ;;  %v460_v62 = vadd.f32 %v458_v59, %v444_v57 }
 0x15d   : > { %v445_v58 = vmul.f32 %v442_v45, %v431_v56 }
 0x15f   : > { %v461_v61 = vadd.f32 %v459_v60, %v445_v58 }
 0x161   : > { %v462_v63 = vpack.c.bf16 %v461_v61, %v460_v62 }
 0x163   : > { %684 = vmatmul.mubr.msk.bf16.vlgmr.msra.gmra.mrb[0].mxu0 %vm361_vm0, %v462_v63 }
 0x236   : > { %v515_v1 = vpop.f32.mrb[0].mxu0 }
 0x237   : > { %v516_v5 = vadd.f32 %v670_v0, %v515_v1  ;;  %v685_v6 = vpop.f32.mrb[1].mxu0 }
 0x238   : > { %v518_v3 = vpop.f32.mrb[2].mxu0 }
 0x239   : > { %v524_v7 = vadd.f32 %v522_v2, %v516_v5  ;;  %v519_v8 = vadd.f32 %v670_v0, %v518_v3  ;;  %v686_v9 = vpop.f32.mrb[3].mxu0 }
 0x23b   : > { %527 = vst.msk [vmem:[%s347_s22] sm:$0xff] %vm526_vm9, %v524_v7  ;;  %v525_v10 = vadd.f32 %v523_v4, %v519_v8 }
 0x23d   : > { %529 = vst.msk [vmem:[%s347_s22 + $0x8] sm:$0x3] %vm528_vm10, %v525_v10 }
 0x23e PF: > { %s20_s30 = sadd.s32 1, %s715_s30  }
 0x23f   : > { %p17_p4 = scmp.ge.s32.totalorder %s20_s30, 4  }
 0x241   :  { %19 = sbr.rel (!%p17_p4) target bundleno = 1 (0x1), region = 102 }

// kernel: _lambda_.14
= control target key start
LH: loop header
LB: loop body
LE: loop exit
PB: predicated region body
PF: predicated region fallthrough
CT: control target
= control target key end

     0   :  { %vm22_vm0 = vcmask 781312   ;;  %v164_v1 = vmov 0.0   ;;  %vm54_vm1 = vcmask 261120   ;;  %vm19_vm2 = vcmask 785408   ;;  %s218_s1 = inlined_call_operand.vmem [shape: bf16[32,96], index: 1, kind: input, shape index: {}]   ;;  %s219_s0 = inlined_call_operand.vmem [shape: bf16[20,32], index: 0, kind: input, shape index: {}]   ;;  %s220_s2 = inlined_call_operand.vmem [shape: f32[1,96], index: 2, kind: input, shape index: {}]   ;;  %s221_s3 = inlined_call_operand.vmem [shape: f32[20,96], index: 3, kind: output, shape index: {}]  }
   0x1   :  { %v160_v0 = vld [vmem:[%s218_s1] sm:$0xff]   ;;  %23 = vst.msk [vmem:[#allocation2 + $0x10] sm:$0xf] %vm22_vm0, %v164_v1  ;;  %v161_v2 = vld [vmem:[%s218_s1 + $0x8] sm:$0xff]  }
   0x2   :  { %151 = vmatprep.subr.bf16.mxu0 %v160_v0  ;;  %v162_v3 = vld [vmem:[%s219_s0] sm:$0xff]   ;;  %v163_v4 = vld [vmem:[%s219_s0 + $0x8] ss:$0 sps:$4 sm:$0x33]   ;;  %20 = vst.msk [vmem:[#allocation2] sm:$0xff] %vm19_vm2, %v164_v1  ;;  %21 = vst.msk [vmem:[#allocation2 + $0x8] sm:$0xff] %vm19_vm2, %v164_v1 }
   0x3   :  { %152 = vmatpush3.bf16.msra.mxu0 %v160_v0  ;;  %155 = vmatprep.mubr.msk.bf16.mxu0 %vm54_vm1, %v162_v3  ;;  %v146_v15 = vld [vmem:[%s220_s2] ss:$0 sm:$0xff] }
   0x4   :  { %153 = vmatprep.subr.bf16.mxu0 %v161_v2 }
   0x7   :  { %154 = vmatpush3.bf16.msra.mxu0 %v161_v2 }
   0x8   :  { %v26_v5 = vld [vmem:[#allocation2 + $0x10] sm:$0xf] }
   0x9   :  { %v24_v6 = vld [vmem:[#allocation2] sm:$0xff]  ;;  %v25_v10 = vld [vmem:[#allocation2 + $0x8] sm:$0xff] }
   0xa   :  { %156 = vmatmul.mubr.msk.bf16.vlgmr.msra.gmra.mrb[0].mxu0 %vm54_vm1, %v163_v4 }
  0xdd   :  { %v157_v7 = vpop.f32.mrb[0].mxu0 }
  0xde   :  { %v111_v8 = vadd.f32 %v157_v7, %v26_v5  ;;  %v95_v9 = vpop.f32.mrb[1].mxu0 }
  0xdf   :  { %v109_v11 = vadd.f32 %v95_v9, %v24_v6  ;;  %v158_v12 = vpop.f32.mrb[2].mxu0 }
  0xe0   :  { %116 = vst.msk [vmem:[#allocation2 + $0x10] sm:$0xf] %vm22_vm0, %v111_v8  ;;  %v98_v13 = vpop.f32.mrb[3].mxu0 }
  0xe1   :  { %113 = vst.msk [vmem:[#allocation2] sm:$0xff] %vm19_vm2, %v109_v11  ;;  %v110_v14 = vadd.f32 %v98_v13, %v25_v10 }
  0xe3   :  { %114 = vst.msk [vmem:[#allocation2 + $0x8] sm:$0xff] %vm19_vm2, %v110_v14 }
  0xe7   :  { %v122_v16 = vld [vmem:[#allocation2 + $0x10] sm:$0xf] }
  0xe8   :  { %v132_v17 = vadd.f32 %v146_v15, %v122_v16  ;;  %v120_v18 = vld [vmem:[#allocation2] sm:$0xff] }
  0xe9   :  { %v130_v19 = vadd.f32 %v146_v15, %v120_v18 }
  0xea   :  { %135 = vst.msk [vmem:[%s221_s3 + $0x10] sm:$0xf] %vm22_vm0, %v132_v17  ;;  %v121_v20 = vld [vmem:[#allocation2 + $0x8] sm:$0xff] }
  0xeb   :  { %133 = vst.msk [vmem:[%s221_s3] sm:$0xff] %vm19_vm2, %v130_v19  ;;  %v131_v21 = vadd.f32 %v146_v15, %v121_v20 }
  0xed   :  { %134 = vst.msk [vmem:[%s221_s3 + $0x8] sm:$0xff] %vm19_vm2, %v131_v21 }

// kernel: reverse.5
= control target key start
LH: loop header
LB: loop body
LE: loop exit
PB: predicated region body
PF: predicated region fallthrough
CT: control target
= control target key end

     0   :  { %v2_v0 = vlaneseq  ;;  %s238_s0 = inlined_call_operand.vmem [shape: f32[2,4,8,4], index: 0, kind: input, shape index: {}]   ;;  %s239_s1 = inlined_call_operand.vmem [shape: f32[2,4,8,4], index: 1, kind: output, shape index: {}]  }
   0x1   :  { %v50_v2 = vld [vmem:[%s238_s0 + $0x10] sm:$0xff]  ;;  %v46_v3 = vld [vmem:[%s238_s0] sm:$0xff]  ;;  %v52_v4 = vld [vmem:[%s238_s0 + $0x18] sm:$0xff] }
   0x2   :  { %v3_v1 = vsub.s32 3, %v2_v0  ;;  %v48_v5 = vld [vmem:[%s238_s0 + $0x8] sm:$0xff]  ;;  %v54_v7 = vld [vmem:[%s238_s0 + $0x20] sm:$0xff]  ;;  %v60_v8 = vld [vmem:[%s238_s0 + $0x38] sm:$0xff] }
   0x3   :  { %v56_v6 = vld [vmem:[%s238_s0 + $0x28] sm:$0xff]  ;;  %v58_v9 = vld [vmem:[%s238_s0 + $0x30] sm:$0xff] }
   0x4   :  { %4 = vset.pattern.permute.xlu0 %v3_v1  ;;  %179 = vset.pattern.permute.xlu1 %v3_v1 }
   0x5   :  { %78 = vperm.xlu1 %179, %v50_v2   ;;  %66 = vperm.xlu0 %4, %v46_v3  }
   0x9   :  { %84 = vperm.xlu1 %179, %v52_v4   ;;  %72 = vperm.xlu0 %4, %v48_v5  }
   0xd   :  { %96 = vperm.xlu1 %179, %v56_v6   ;;  %90 = vperm.xlu0 %4, %v54_v7  }
  0x11   :  { %108 = vperm.xlu1 %179, %v60_v8   ;;  %102 = vperm.xlu0 %4, %v58_v9  }
  0x84   :  { %v79_v10 = vpop.permute.xlu1 %78  ;;  %v67_v11 = vpop.permute.xlu0 %66 }
  0x85   :  { %157 = vst [vmem:[%s239_s1 + $0x10] sm:$0xff] %v79_v10  ;;  %153 = vst [vmem:[%s239_s1] sm:$0xff] %v67_v11 }
  0x88   :  { %v85_v12 = vpop.permute.xlu1 %84  ;;  %v73_v13 = vpop.permute.xlu0 %72 }
  0x89   :  { %159 = vst [vmem:[%s239_s1 + $0x18] sm:$0xff] %v85_v12  ;;  %155 = vst [vmem:[%s239_s1 + $0x8] sm:$0xff] %v73_v13 }
  0x8c   :  { %v97_v14 = vpop.permute.xlu1 %96  ;;  %v91_v15 = vpop.permute.xlu0 %90 }
  0x8d   :  { %163 = vst [vmem:[%s239_s1 + $0x28] sm:$0xff] %v97_v14  ;;  %161 = vst [vmem:[%s239_s1 + $0x20] sm:$0xff] %v91_v15 }
  0x90   :  { %v109_v16 = vpop.permute.xlu1 %108  ;;  %v103_v17 = vpop.permute.xlu0 %102 }
  0x91   :  { %167 = vst [vmem:[%s239_s1 + $0x38] sm:$0xff] %v109_v16  ;;  %165 = vst [vmem:[%s239_s1 + $0x30] sm:$0xff] %v103_v17 }

// kernel: _lambda_.15
= control target key start
LH: loop header
LB: loop body
LE: loop exit
PB: predicated region body
PF: predicated region fallthrough
CT: control target
= control target key end

     0   :  { %vm22_vm0 = vcmask 261120   ;;  %vm25_vm1 = vcmask 257024   ;;  %v172_v1 = vmov 0.0   ;;  %s242_s1 = inlined_call_operand.vmem [shape: bf16[32,32], index: 1, kind: input, shape index: {}]   ;;  %s243_s0 = inlined_call_operand.vmem [shape: bf16[20,32], index: 0, kind: input, shape index: {}]   ;;  %s244_s2 = inlined_call_operand.vmem [shape: f32[1,32], index: 2, kind: input, shape index: {}]   ;;  %s245_s3 = inlined_call_operand.vmem [shape: f32[20,32], index: 3, kind: input, shape index: {}]   ;;  %s246_s4 = inlined_call_operand.vmem [shape: f32[20,32], index: 4, kind: output, shape index: {}]  }
   0x1   :  { %v168_v0 = vld [vmem:[%s242_s1] sm:$0xff]   ;;  %26 = vst.msk [vmem:[#allocation2 + $0x10] sm:$0xf] %vm25_vm1, %v172_v1  ;;  %v169_v2 = vld [vmem:[%s242_s1 + $0x8] sm:$0xff]   ;;  %v137_v17 = vld [vmem:[%s245_s3 + $0x10] sm:$0xf] }
   0x2   :  { %23 = vst.msk [vmem:[#allocation2] sm:$0xff] %vm22_vm0, %v172_v1  ;;  %24 = vst.msk [vmem:[#allocation2 + $0x8] sm:$0xff] %vm22_vm0, %v172_v1  ;;  %159 = vmatprep.subr.bf16.mxu0 %v168_v0  ;;  %v170_v3 = vld [vmem:[%s243_s0] sm:$0xff]   ;;  %v171_v4 = vld [vmem:[%s243_s0 + $0x8] ss:$0 sps:$4 sm:$0x33]  }
   0x3   :  { %160 = vmatpush3.bf16.msra.mxu0 %v168_v0  ;;  %163 = vmatprep.mubr.msk.bf16.mxu0 %vm22_vm0, %v170_v3  ;;  %v154_v15 = vld [vmem:[%s244_s2] ss:$0 sm:$0xff]  ;;  %v136_v22 = vld [vmem:[%s245_s3 + $0x8] sm:$0xff] }
   0x4   :  { %161 = vmatprep.subr.bf16.mxu0 %v169_v2  ;;  %v135_v19 = vld [vmem:[%s245_s3] sm:$0xff] }
   0x7   :  { %162 = vmatpush3.bf16.msra.mxu0 %v169_v2 }
   0x8   :  { %v29_v5 = vld [vmem:[#allocation2 + $0x10] sm:$0xf] }
   0x9   :  { %v27_v6 = vld [vmem:[#allocation2] sm:$0xff]  ;;  %v28_v10 = vld [vmem:[#allocation2 + $0x8] sm:$0xff] }
   0xa   :  { %164 = vmatmul.mubr.msk.bf16.vlgmr.msra.gmra.mrb[0].mxu0 %vm22_vm0, %v171_v4 }
  0xdd   :  { %v165_v7 = vpop.f32.mrb[0].mxu0 }
  0xde   :  { %v114_v8 = vadd.f32 %v165_v7, %v29_v5  ;;  %v98_v9 = vpop.f32.mrb[1].mxu0 }
  0xdf   :  { %v112_v11 = vadd.f32 %v98_v9, %v27_v6  ;;  %v166_v12 = vpop.f32.mrb[2].mxu0 }
  0xe0   :  { %118 = vst.msk [vmem:[#allocation2 + $0x10] sm:$0xf] %vm25_vm1, %v114_v8  ;;  %v101_v13 = vpop.f32.mrb[3].mxu0 }
  0xe1   :  { %115 = vst.msk [vmem:[#allocation2] sm:$0xff] %vm22_vm0, %v112_v11  ;;  %v113_v14 = vadd.f32 %v101_v13, %v28_v10 }
  0xe3   :  { %116 = vst.msk [vmem:[#allocation2 + $0x8] sm:$0xff] %vm22_vm0, %v113_v14 }
  0xe7   :  { %v124_v16 = vld [vmem:[#allocation2 + $0x10] sm:$0xf] }
  0xe8   :  { %v134_v18 = vadd.f32 %v154_v15, %v124_v16  ;;  %v122_v20 = vld [vmem:[#allocation2] sm:$0xff] }
  0xe9   :  { %v132_v21 = vadd.f32 %v154_v15, %v122_v20 }
  0xea   :  { %v140_v23 = vadd.f32 %v137_v17, %v134_v18  ;;  %v123_v24 = vld [vmem:[#allocation2 + $0x8] sm:$0xff] }
  0xeb   :  { %v138_v25 = vadd.f32 %v135_v19, %v132_v21  ;;  %v133_v26 = vadd.f32 %v154_v15, %v123_v24 }
  0xec   :  { %143 = vst.msk [vmem:[%s246_s4 + $0x10] sm:$0xf] %vm25_vm1, %v140_v23 }
  0xed   :  { %141 = vst.msk [vmem:[%s246_s4] sm:$0xff] %vm22_vm0, %v138_v25  ;;  %v139_v27 = vadd.f32 %v136_v22, %v133_v26 }
  0xef   :  { %142 = vst.msk [vmem:[%s246_s4 + $0x8] sm:$0xff] %vm22_vm0, %v139_v27 }

// kernel: _lambda_.16
= control target key start
LH: loop header
LB: loop body
LE: loop exit
PB: predicated region body
PF: predicated region fallthrough
CT: control target
= control target key end

     0   :  { %vm84_vm0 = vcmask 1044480   ;;  %vm19_vm1 = vcmask 195584   ;;  %v243_v1 = vmov 0.0   ;;  %vm71_vm2 = vcmask 80896   ;;  %s333_s1 = inlined_call_operand.vmem [shape: bf16[10,24], index: 1, kind: input, shape index: {}]   ;;  %s334_s0 = inlined_call_operand.vmem [shape: bf16[64,10], index: 0, kind: input, shape index: {}]   ;;  %s335_s2 = inlined_call_operand.vmem [shape: f32[1,24], index: 2, kind: input, shape index: {}]   ;;  %s336_s3 = inlined_call_operand.vmem [shape: f32[64,24], index: 3, kind: output, shape index: {}]  }
   0x1   :  { %v238_v0 = vld [vmem:[%s333_s1] sm:$0x1f]   ;;  %22 = vst.msk [vmem:[#allocation2 + $0x10] sm:$0xff] %vm19_vm1, %v243_v1  ;;  %20 = vst.msk [vmem:[#allocation2] sm:$0xff] %vm19_vm1, %v243_v1  ;;  %v240_v4 = vld [vmem:[%s334_s0 + $0x10] sm:$0xff]  }
   0x2   :  { %21 = vst.msk [vmem:[#allocation2 + $0x8] sm:$0xff] %vm19_vm1, %v243_v1  ;;  %23 = vst.msk [vmem:[#allocation2 + $0x18] sm:$0xff] %vm19_vm1, %v243_v1  ;;  %v239_v2 = vld [vmem:[%s334_s0] sm:$0xff]   ;;  %235 = vmatprep.subr.msk.bf16.mxu0 %vm84_vm0, %v238_v0  ;;  %236 = vmatprep.subr.msk.bf16.mxu1 %vm84_vm0, %v238_v0  ;;  %v86_v3 = vsel %vm84_vm0, %v238_v0, 0  ;;  %v241_v5 = vld [vmem:[%s334_s0 + $0x8] sm:$0xff]  }
   0x3   :  { %24 = vst.msk [vmem:[#allocation2 + $0x20] sm:$0xff] %vm19_vm1, %v243_v1  ;;  %25 = vst.msk [vmem:[#allocation2 + $0x28] sm:$0xff] %vm19_vm1, %v243_v1  ;;  %224 = vmatpush3.bf16.msra.mxu0 %v86_v3  ;;  %234 = vmatpush3.bf16.msra.mxu1 %v86_v3  ;;  %v242_v6 = vld [vmem:[%s334_s0 + $0x18] sm:$0xff]   ;;  %v217_v31 = vld [vmem:[%s335_s2] ss:$0 sm:$0xff] }
   0x4   :  { %26 = vst.msk [vmem:[#allocation2 + $0x30] sm:$0xff] %vm19_vm1, %v243_v1  ;;  %27 = vst.msk [vmem:[#allocation2 + $0x38] sm:$0xff] %vm19_vm1, %v243_v1  ;;  %225 = vmatprep.mubr.msk.bf16.mxu0 %vm71_vm2, %v239_v2  ;;  %229 = vmatprep.mubr.msk.bf16.mxu1 %vm71_vm2, %v240_v4 }
   0x6   :  { %226 = vmatmul.mubr.msk.bf16.vlgmr.msra.gmra.mrb[0].mxu0 %vm71_vm2, %v241_v5  ;;  %230 = vmatmul.mubr.msk.bf16.vlgmr.msra.gmra.mrb[0].mxu1 %vm71_vm2, %v242_v6 }
   0x8   :  { %v30_v7 = vld [vmem:[#allocation2 + $0x10] sm:$0xff]  ;;  %v28_v9 = vld [vmem:[#allocation2] sm:$0xff] }
   0x9   :  { %v31_v13 = vld [vmem:[#allocation2 + $0x18] sm:$0xff]  ;;  %v29_v19 = vld [vmem:[#allocation2 + $0x8] sm:$0xff] }
   0xa   :  { %v32_v10 = vld [vmem:[#allocation2 + $0x20] sm:$0xff]  ;;  %v33_v20 = vld [vmem:[#allocation2 + $0x28] sm:$0xff] }
   0xb   :  { %v34_v8 = vld [vmem:[#allocation2 + $0x30] sm:$0xff]  ;;  %v35_v14 = vld [vmem:[#allocation2 + $0x38] sm:$0xff] }
  0xd9   :  { %v227_v11 = vpop.f32.mrb[0].mxu0  ;;  %v231_v12 = vpop.f32.mrb[0].mxu1 }
  0xda   :  { %v155_v15 = vadd.f32 %v227_v11, %v30_v7  ;;  %v159_v16 = vadd.f32 %v231_v12, %v34_v8  ;;  %v122_v17 = vpop.f32.mrb[1].mxu0  ;;  %v138_v18 = vpop.f32.mrb[1].mxu1 }
  0xdb   :  { %v153_v21 = vadd.f32 %v122_v17, %v28_v9  ;;  %v157_v22 = vadd.f32 %v138_v18, %v32_v10  ;;  %v228_v23 = vpop.f32.mrb[2].mxu0  ;;  %v232_v24 = vpop.f32.mrb[2].mxu1 }
  0xdc   :  { %164 = vst.msk [vmem:[#allocation2 + $0x10] sm:$0xff] %vm19_vm1, %v155_v15  ;;  %168 = vst.msk [vmem:[#allocation2 + $0x30] sm:$0xff] %vm19_vm1, %v159_v16  ;;  %v156_v25 = vadd.f32 %v228_v23, %v31_v13  ;;  %v160_v26 = vadd.f32 %v232_v24, %v35_v14  ;;  %v125_v27 = vpop.f32.mrb[3].mxu0  ;;  %v141_v28 = vpop.f32.mrb[3].mxu1 }
  0xdd   :  { %162 = vst.msk [vmem:[#allocation2] sm:$0xff] %vm19_vm1, %v153_v21  ;;  %166 = vst.msk [vmem:[#allocation2 + $0x20] sm:$0xff] %vm19_vm1, %v157_v22  ;;  %v154_v29 = vadd.f32 %v125_v27, %v29_v19  ;;  %v158_v30 = vadd.f32 %v141_v28, %v33_v20 }
  0xde   :  { %165 = vst.msk [vmem:[#allocation2 + $0x18] sm:$0xff] %vm19_vm1, %v156_v25  ;;  %169 = vst.msk [vmem:[#allocation2 + $0x38] sm:$0xff] %vm19_vm1, %v160_v26 }
  0xdf   :  { %163 = vst.msk [vmem:[#allocation2 + $0x8] sm:$0xff] %vm19_vm1, %v154_v29  ;;  %167 = vst.msk [vmem:[#allocation2 + $0x28] sm:$0xff] %vm19_vm1, %v158_v30 }
  0xe3   :  { %v175_v32 = vld [vmem:[#allocation2 + $0x10] sm:$0xff] }
  0xe4   :  { %v179_v33 = vld [vmem:[#allocation2 + $0x30] sm:$0xff]  ;;  %v190_v34 = vadd.f32 %v217_v31, %v175_v32  ;;  %v173_v36 = vld [vmem:[#allocation2] sm:$0xff] }
  0xe5   :  { %v194_v35 = vadd.f32 %v217_v31, %v179_v33  ;;  %v177_v37 = vld [vmem:[#allocation2 + $0x20] sm:$0xff]  ;;  %v188_v38 = vadd.f32 %v217_v31, %v173_v36  ;;  %v176_v40 = vld [vmem:[#allocation2 + $0x18] sm:$0xff] }
  0xe6   :  { %v192_v39 = vadd.f32 %v217_v31, %v177_v37  ;;  %v180_v41 = vld [vmem:[#allocation2 + $0x38] sm:$0xff]  ;;  %198 = vst.msk [vmem:[%s336_s3 + $0x10] sm:$0xff] %vm19_vm1, %v190_v34  ;;  %v191_v42 = vadd.f32 %v217_v31, %v176_v40  ;;  %v174_v44 = vld [vmem:[#allocation2 + $0x8] sm:$0xff] }
  0xe7   :  { %202 = vst.msk [vmem:[%s336_s3 + $0x30] sm:$0xff] %vm19_vm1, %v194_v35  ;;  %v195_v43 = vadd.f32 %v217_v31, %v180_v41  ;;  %v178_v45 = vld [vmem:[#allocation2 + $0x28] sm:$0xff]  ;;  %196 = vst.msk [vmem:[%s336_s3] sm:$0xff] %vm19_vm1, %v188_v38  ;;  %v189_v46 = vadd.f32 %v217_v31, %v174_v44 }
  0xe8   :  { %200 = vst.msk [vmem:[%s336_s3 + $0x20] sm:$0xff] %vm19_vm1, %v192_v39  ;;  %v193_v47 = vadd.f32 %v217_v31, %v178_v45  ;;  %199 = vst.msk [vmem:[%s336_s3 + $0x18] sm:$0xff] %vm19_vm1, %v191_v42 }
  0xe9   :  { %203 = vst.msk [vmem:[%s336_s3 + $0x38] sm:$0xff] %vm19_vm1, %v195_v43  ;;  %197 = vst.msk [vmem:[%s336_s3 + $0x8] sm:$0xff] %vm19_vm1, %v189_v46 }
  0xea   :  { %201 = vst.msk [vmem:[%s336_s3 + $0x28] sm:$0xff] %vm19_vm1, %v193_v47 }

// kernel: _lambda_.17
= control target key start
LH: loop header
LB: loop body
LE: loop exit
PB: predicated region body
PF: predicated region fallthrough
CT: control target
= control target key end

     0   :  { %vm81_vm0 = vcmask 1043456   ;;  %vm68_vm1 = vcmask 64512   ;;  %vm22_vm2 = vcmask 80896   ;;  %v254_v1 = vmov 0.0   ;;  %s377_s1 = inlined_call_operand.vmem [shape: bf16[8,10], index: 1, kind: input, shape index: {}]   ;;  %s378_s0 = inlined_call_operand.vmem [shape: bf16[64,8], index: 0, kind: input, shape index: {}]   ;;  %s379_s2 = inlined_call_operand.vmem [shape: f32[1,10], index: 2, kind: input, shape index: {}]   ;;  %s380_s3 = inlined_call_operand.vmem [shape: f32[64,10], index: 3, kind: input, shape index: {}]   ;;  %s381_s4 = inlined_call_operand.vmem [shape: f32[64,10], index: 4, kind: output, shape index: {}]  }
   0x1   :  { %v47_v0 = vld [vmem:[%s377_s1] sm:$0xf]  ;;  %25 = vst.msk [vmem:[#allocation2 + $0x10] sm:$0xff] %vm22_vm2, %v254_v1  ;;  %23 = vst.msk [vmem:[#allocation2] sm:$0xff] %vm22_vm2, %v254_v1  ;;  %v251_v4 = vld [vmem:[%s378_s0 + $0x10] sm:$0xff]  }
   0x2   :  { %24 = vst.msk [vmem:[#allocation2 + $0x8] sm:$0xff] %vm22_vm2, %v254_v1  ;;  %26 = vst.msk [vmem:[#allocation2 + $0x18] sm:$0xff] %vm22_vm2, %v254_v1  ;;  %247 = vmatprep.subr.msk.bf16.mxu0 %vm81_vm0, %v47_v0  ;;  %248 = vmatprep.subr.msk.bf16.mxu1 %vm81_vm0, %v47_v0  ;;  %v83_v2 = vsel %vm81_vm0, %v47_v0, 0  ;;  %v250_v3 = vld [vmem:[%s378_s0] sm:$0xff]   ;;  %v252_v5 = vld [vmem:[%s378_s0 + $0x8] sm:$0xff]  }
   0x3   :  { %27 = vst.msk [vmem:[#allocation2 + $0x20] sm:$0xff] %vm22_vm2, %v254_v1  ;;  %28 = vst.msk [vmem:[#allocation2 + $0x28] sm:$0xff] %vm22_vm2, %v254_v1  ;;  %236 = vmatpush3.bf16.msra.mxu0 %v83_v2  ;;  %246 = vmatpush3.bf16.msra.mxu1 %v83_v2  ;;  %v253_v6 = vld [vmem:[%s378_s0 + $0x18] sm:$0xff]   ;;  %v229_v31 = vld [vmem:[%s379_s2] ss:$0 sm:$0xff] }
   0x4   :  { %29 = vst.msk [vmem:[#allocation2 + $0x30] sm:$0xff] %vm22_vm2, %v254_v1  ;;  %30 = vst.msk [vmem:[#allocation2 + $0x38] sm:$0xff] %vm22_vm2, %v254_v1  ;;  %237 = vmatprep.mubr.msk.bf16.mxu0 %vm68_vm1, %v250_v3  ;;  %241 = vmatprep.mubr.msk.bf16.mxu1 %vm68_vm1, %v251_v4  ;;  %v195_v32 = vld [vmem:[%s380_s3 + $0x10] sm:$0xff]  ;;  %v193_v35 = vld [vmem:[%s380_s3] sm:$0xff] }
   0x5   :  { %v199_v33 = vld [vmem:[%s380_s3 + $0x30] sm:$0xff]  ;;  %v197_v36 = vld [vmem:[%s380_s3 + $0x20] sm:$0xff]  ;;  %v196_v40 = vld [vmem:[%s380_s3 + $0x18] sm:$0xff] }
   0x6   :  { %238 = vmatmul.mubr.msk.bf16.vlgmr.msra.gmra.mrb[0].mxu0 %vm68_vm1, %v252_v5  ;;  %242 = vmatmul.mubr.msk.bf16.vlgmr.msra.gmra.mrb[0].mxu1 %vm68_vm1, %v253_v6  ;;  %v200_v45 = vld [vmem:[%s380_s3 + $0x38] sm:$0xff]  ;;  %v194_v51 = vld [vmem:[%s380_s3 + $0x8] sm:$0xff] }
   0x7   :  { %v198_v57 = vld [vmem:[%s380_s3 + $0x28] sm:$0xff] }
   0x8   :  { %v33_v7 = vld [vmem:[#allocation2 + $0x10] sm:$0xff]  ;;  %v31_v9 = vld [vmem:[#allocation2] sm:$0xff] }
   0x9   :  { %v34_v12 = vld [vmem:[#allocation2 + $0x18] sm:$0xff]  ;;  %v32_v17 = vld [vmem:[#allocation2 + $0x8] sm:$0xff] }
   0xa   :  { %v35_v11 = vld [vmem:[#allocation2 + $0x20] sm:$0xff]  ;;  %v36_v22 = vld [vmem:[#allocation2 + $0x28] sm:$0xff] }
   0xb   :  { %v37_v8 = vld [vmem:[#allocation2 + $0x30] sm:$0xff]  ;;  %v38_v16 = vld [vmem:[#allocation2 + $0x38] sm:$0xff] }
  0xd9   :  { %v239_v10 = vpop.f32.mrb[0].mxu0  ;;  %v243_v14 = vpop.f32.mrb[0].mxu1 }
  0xda   :  { %v152_v13 = vadd.f32 %v239_v10, %v33_v7  ;;  %v119_v15 = vpop.f32.mrb[1].mxu0  ;;  %v156_v18 = vadd.f32 %v243_v14, %v37_v8  ;;  %v135_v20 = vpop.f32.mrb[1].mxu1 }
  0xdb   :  { %v150_v19 = vadd.f32 %v119_v15, %v31_v9  ;;  %v240_v21 = vpop.f32.mrb[2].mxu0  ;;  %v154_v23 = vadd.f32 %v135_v20, %v35_v11  ;;  %v244_v25 = vpop.f32.mrb[2].mxu1 }
  0xdc   :  { %161 = vst.msk [vmem:[#allocation2 + $0x10] sm:$0xff] %vm22_vm2, %v152_v13  ;;  %v153_v24 = vadd.f32 %v240_v21, %v34_v12  ;;  %v122_v26 = vpop.f32.mrb[3].mxu0  ;;  %165 = vst.msk [vmem:[#allocation2 + $0x30] sm:$0xff] %vm22_vm2, %v156_v18  ;;  %v157_v27 = vadd.f32 %v244_v25, %v38_v16  ;;  %v138_v29 = vpop.f32.mrb[3].mxu1 }
  0xdd   :  { %159 = vst.msk [vmem:[#allocation2] sm:$0xff] %vm22_vm2, %v150_v19  ;;  %v151_v28 = vadd.f32 %v122_v26, %v32_v17  ;;  %163 = vst.msk [vmem:[#allocation2 + $0x20] sm:$0xff] %vm22_vm2, %v154_v23  ;;  %v155_v30 = vadd.f32 %v138_v29, %v36_v22 }
  0xde   :  { %162 = vst.msk [vmem:[#allocation2 + $0x18] sm:$0xff] %vm22_vm2, %v153_v24  ;;  %166 = vst.msk [vmem:[#allocation2 + $0x38] sm:$0xff] %vm22_vm2, %v157_v27 }
  0xdf   :  { %160 = vst.msk [vmem:[#allocation2 + $0x8] sm:$0xff] %vm22_vm2, %v151_v28  ;;  %164 = vst.msk [vmem:[#allocation2 + $0x28] sm:$0xff] %vm22_vm2, %v155_v30 }
  0xe3   :  { %v172_v34 = vld [vmem:[#allocation2 + $0x10] sm:$0xff] }
  0xe4   :  { %v187_v37 = vadd.f32 %v229_v31, %v172_v34  ;;  %v176_v38 = vld [vmem:[#allocation2 + $0x30] sm:$0xff]  ;;  %v170_v39 = vld [vmem:[#allocation2] sm:$0xff] }
  0xe5   :  { %v191_v41 = vadd.f32 %v229_v31, %v176_v38  ;;  %v185_v42 = vadd.f32 %v229_v31, %v170_v39  ;;  %v174_v43 = vld [vmem:[#allocation2 + $0x20] sm:$0xff]  ;;  %v173_v44 = vld [vmem:[#allocation2 + $0x18] sm:$0xff] }
  0xe6   :  { %v203_v46 = vadd.f32 %v195_v32, %v187_v37  ;;  %v189_v47 = vadd.f32 %v229_v31, %v174_v43  ;;  %v188_v48 = vadd.f32 %v229_v31, %v173_v44  ;;  %v177_v49 = vld [vmem:[#allocation2 + $0x38] sm:$0xff]  ;;  %v171_v50 = vld [vmem:[#allocation2 + $0x8] sm:$0xff] }
  0xe7   :  { %v207_v52 = vadd.f32 %v199_v33, %v191_v41  ;;  %v201_v53 = vadd.f32 %v193_v35, %v185_v42  ;;  %v192_v54 = vadd.f32 %v229_v31, %v177_v49  ;;  %v186_v55 = vadd.f32 %v229_v31, %v171_v50  ;;  %v175_v56 = vld [vmem:[#allocation2 + $0x28] sm:$0xff] }
  0xe8   :  { %211 = vst.msk [vmem:[%s381_s4 + $0x10] sm:$0xff] %vm22_vm2, %v203_v46  ;;  %v205_v58 = vadd.f32 %v197_v36, %v189_v47  ;;  %v204_v59 = vadd.f32 %v196_v40, %v188_v48  ;;  %v190_v60 = vadd.f32 %v229_v31, %v175_v56 }
  0xe9   :  { %215 = vst.msk [vmem:[%s381_s4 + $0x30] sm:$0xff] %vm22_vm2, %v207_v52  ;;  %209 = vst.msk [vmem:[%s381_s4] sm:$0xff] %vm22_vm2, %v201_v53  ;;  %v208_v61 = vadd.f32 %v200_v45, %v192_v54  ;;  %v202_v62 = vadd.f32 %v194_v51, %v186_v55 }
  0xea   :  { %213 = vst.msk [vmem:[%s381_s4 + $0x20] sm:$0xff] %vm22_vm2, %v205_v58  ;;  %212 = vst.msk [vmem:[%s381_s4 + $0x18] sm:$0xff] %vm22_vm2, %v204_v59  ;;  %v206_v63 = vadd.f32 %v198_v57, %v190_v60 }
  0xeb   :  { %216 = vst.msk [vmem:[%s381_s4 + $0x38] sm:$0xff] %vm22_vm2, %v208_v61  ;;  %210 = vst.msk [vmem:[%s381_s4 + $0x8] sm:$0xff] %vm22_vm2, %v202_v62 }
  0xec   :  { %214 = vst.msk [vmem:[%s381_s4 + $0x28] sm:$0xff] %vm22_vm2, %v206_v63 }

// kernel: _lambda_.24
= control target key start
LH: loop header
LB: loop body
LE: loop exit
PB: predicated region body
PF: predicated region fallthrough
CT: control target
= control target key end

     0   :  { %vm17_vm0 = vcmask 261120   ;;  %vm24_vm1 = vcmask 257024   ;;  %s147_s0 = inlined_call_operand.vmem [shape: f32[20,32], index: 0, kind: input, shape index: {}]   ;;  %s148_s1 = inlined_call_operand.vmem [shape: f32[1,32], index: 1, kind: input, shape index: {}]   ;;  %s149_s2 = inlined_call_operand.vmem [shape: f32[1,32], index: 2, kind: input, shape index: {}]   ;;  %s150_s3 = inlined_call_operand.vmem [shape: f32[20,32], index: 3, kind: output, shape index: {}]  }
   0x1   :  { %v14_v0 = vld [vmem:[%s147_s0] sm:$0xff]  ;;  %v16_v1 = vld [vmem:[%s147_s0 + $0x10] sm:$0xf]  ;;  %v15_v2 = vld [vmem:[%s147_s0 + $0x8] sm:$0xff] }
   0x2   :  { %v18_v3 = vsel %vm17_vm0, %v14_v0, 0.0  ;;  %v25_v4 = vsel %vm24_vm1, %v16_v1, 0.0  ;;  %v21_v5 = vsel %vm17_vm0, %v15_v2, 0.0  ;;  %v86_v31 = vld [vmem:[%s148_s1] ss:$0 sm:$0xff] }
   0x3   :  { %19 = vadd.xlane.f32.xlu0 %v18_v3  ;;  %26 = vadd.xlane.f32.xlu1 %v25_v4  ;;  %v87_v33 = vld [vmem:[%s149_s2] ss:$0 sm:$0xff] }
   0x7   :  { %22 = vadd.xlane.f32.xlu0 %v21_v5 }
  0x90   :  { %v20_v6 = vpop.xlane.xlu0 %19  ;;  %v27_v7 = vpop.xlane.xlu1 %26 }
  0x91   :  { %v29_v8 = vmul.f32 0.03125, %v20_v6  ;;  %v31_v9 = vmul.f32 0.03125, %v27_v7 }
  0x93   :  { %v32_v10 = vsub.f32 %v14_v0, %v29_v8  ;;  %v34_v11 = vsub.f32 %v16_v1, %v31_v9 }
  0x94   :  { %v23_v12 = vpop.xlane.xlu0 %22 }
  0x95   :  { %v30_v13 = vmul.f32 0.03125, %v23_v12  ;;  %v35_v14 = vmul.f32 %v32_v10, %v32_v10  ;;  %v37_v15 = vmul.f32 %v34_v11, %v34_v11 }
  0x97   :  { %v33_v16 = vsub.f32 %v15_v2, %v30_v13  ;;  %v38_v17 = vsel %vm17_vm0, %v35_v14, 0.0  ;;  %v44_v18 = vsel %vm24_vm1, %v37_v15, 0.0 }
  0x98   :  { %39 = vadd.xlane.f32.xlu1 %v38_v17 }
  0x99   :  { %v36_v19 = vmul.f32 %v33_v16, %v33_v16 }
  0x9b   :  { %v41_v20 = vsel %vm17_vm0, %v36_v19, 0.0 }
  0x9c   :  { %45 = vadd.xlane.f32.xlu1 %v44_v18  ;;  %42 = vadd.xlane.f32.xlu0 %v41_v20 }
 0x125   :  { %v40_v21 = vpop.xlane.xlu1 %39 }
 0x126   :  { %v47_v22 = vmul.f32 0.03125, %v40_v21 }
 0x128   :  { %v50_v23 = vadd.f32 1e-05, %v47_v22 }
 0x129   :  { %v46_v24 = vpop.xlane.xlu1 %45  ;;  %v43_v25 = vpop.xlane.xlu0 %42 }
 0x12a   :  { %88 = vrsqrt.f32 %v50_v23  ;;  %v49_v26 = vmul.f32 0.03125, %v46_v24  ;;  %v48_v27 = vmul.f32 0.03125, %v43_v25 }
 0x12c   :  { %v52_v28 = vadd.f32 1e-05, %v49_v26  ;;  %v51_v29 = vadd.f32 1e-05, %v48_v27 }
 0x12e   :  { %90 = vrsqrt.f32 %v52_v28 }
 0x12f   :  { %92 = vrsqrt.f32 %v51_v29 }
 0x134   :  { %v89_v30 = vpop.eup %88 }
 0x135   :  { %v56_v32 = vmul.f32 %v89_v30, %v32_v10 }
 0x137   :  { %v66_v34 = vmul.f32 %v86_v31, %v56_v32 }
 0x138   :  { %v91_v35 = vpop.eup %90 }
 0x139   :  { %v93_v36 = vpop.eup %92  ;;  %v76_v37 = vadd.f32 %v87_v33, %v66_v34  ;;  %v58_v38 = vmul.f32 %v91_v35, %v34_v11 }
 0x13a   :  { %v57_v39 = vmul.f32 %v93_v36, %v33_v16 }
 0x13b   :  { %79 = vst.msk [vmem:[%s150_s3] sm:$0xff] %vm17_vm0, %v76_v37  ;;  %v68_v40 = vmul.f32 %v86_v31, %v58_v38 }
 0x13c   :  { %v67_v41 = vmul.f32 %v86_v31, %v57_v39 }
 0x13d   :  { %v78_v42 = vadd.f32 %v87_v33, %v68_v40 }
 0x13e   :  { %v77_v43 = vadd.f32 %v87_v33, %v67_v41 }
 0x13f   :  { %81 = vst.msk [vmem:[%s150_s3 + $0x10] sm:$0xf] %vm24_vm1, %v78_v42 }
 0x140   :  { %80 = vst.msk [vmem:[%s150_s3 + $0x8] sm:$0xff] %vm17_vm0, %v77_v43 }

// kernel: _lambda_.18
= control target key start
LH: loop header
LB: loop body
LE: loop exit
PB: predicated region body
PF: predicated region fallthrough
CT: control target
= control target key end

     0   :  { %vm45_vm0 = vcmask 261120   ;;  %vm161_vm1 = vcmask 523264   ;;  %vm224_vm2 = vcmask 257024   ;;  %s357_s1 = inlined_call_operand.vmem [shape: bf16[32,64], index: 1, kind: input, shape index: {}]   ;;  %s358_s0 = inlined_call_operand.vmem [shape: bf16[20,32], index: 0, kind: input, shape index: {}]   ;;  %s359_s2 = inlined_call_operand.vmem [shape: bf16[64,32], index: 2, kind: input, shape index: {}]   ;;  %s360_s3 = inlined_call_operand.vmem [shape: f32[20,32], index: 3, kind: input, shape index: {}]   ;;  %s361_s4 = inlined_call_operand.vmem [shape: f32[20,32], index: 4, kind: output, shape index: {}]  }
   0x1   :  { %v272_v0 = vld [vmem:[%s357_s1] sm:$0xff]   ;;  %v273_v1 = vld [vmem:[%s357_s1 + $0x8] sm:$0xff]   ;;  %v278_v6 = vld [vmem:[%s359_s2 + $0x10] sm:$0xff]  }
   0x2   :  { %252 = vmatprep.subr.bf16.mxu0 %v272_v0  ;;  %v274_v2 = vld [vmem:[%s358_s0] sm:$0xff]   ;;  %v275_v3 = vld [vmem:[%s358_s0 + $0x8] ss:$0 sps:$4 sm:$0x33]   ;;  %v279_v7 = vld [vmem:[%s359_s2 + $0x18] sm:$0xff]  }
   0x3   :  { %253 = vmatpush3.bf16.msra.mxu0 %v272_v0  ;;  %256 = vmatprep.mubr.msk.bf16.mxu0 %vm45_vm0, %v274_v2  ;;  %v276_v4 = vld [vmem:[%s359_s2] sm:$0xff]   ;;  %v277_v5 = vld [vmem:[%s359_s2 + $0x8] sm:$0xff]   ;;  %v218_v41 = vld [vmem:[%s360_s3 + $0x10] sm:$0xf] }
   0x4   :  { %254 = vmatprep.subr.bf16.mxu0 %v273_v1  ;;  %260 = vmatprep.subr.bf16.mxu1 %v276_v4  ;;  %v216_v42 = vld [vmem:[%s360_s3] sm:$0xff]  ;;  %v217_v46 = vld [vmem:[%s360_s3 + $0x8] sm:$0xff] }
   0x5   :  { %261 = vmatpush3.bf16.msra.mxu1 %v276_v4 }
   0x6   :  { %262 = vmatprep.subr.bf16.mxu1 %v277_v5 }
   0x7   :  { %255 = vmatpush3.bf16.msra.mxu0 %v273_v1 }
   0x9   :  { %263 = vmatpush3.bf16.msra.mxu1 %v277_v5 }
   0xa   :  { %257 = vmatmul.mubr.msk.bf16.vlgmr.msra.gmra.mrb[0].mxu0 %vm45_vm0, %v275_v3  ;;  %264 = vmatprep.subr.bf16.mxu1 %v278_v6 }
   0xd   :  { %265 = vmatpush3.bf16.msra.mxu1 %v278_v6 }
   0xe   :  { %266 = vmatprep.subr.bf16.mxu1 %v279_v7 }
  0x11   :  { %267 = vmatpush3.bf16.msra.mxu1 %v279_v7 }
  0xdd   :  { %v258_v8 = vpop.f32.mrb[0].mxu0 }
  0xde   :  { %v105_v9 = vmul.f32 0.044715, %v258_v8  ;;  %v86_v10 = vpop.f32.mrb[1].mxu0  ;;  %v102_v32 = vmul.f32 0.5, %v258_v8 }
  0xdf   :  { %v103_v11 = vmul.f32 0.044715, %v86_v10  ;;  %v259_v12 = vpop.f32.mrb[2].mxu0  ;;  %v100_v33 = vmul.f32 0.5, %v86_v10 }
  0xe0   :  { %v108_v13 = vmul.f32 %v258_v8, %v105_v9  ;;  %v89_v14 = vpop.f32.mrb[3].mxu0 }
  0xe1   :  { %v106_v15 = vmul.f32 %v103_v11, %v86_v10  ;;  %v104_v16 = vmul.f32 0.044715, %v89_v14  ;;  %v101_v34 = vmul.f32 0.5, %v89_v14 }
  0xe2   :  { %v111_v17 = vmul.f32 %v258_v8, %v108_v13 }
  0xe3   :  { %v109_v18 = vmul.f32 %v106_v15, %v86_v10  ;;  %v107_v19 = vmul.f32 %v104_v16, %v89_v14 }
  0xe4   :  { %v114_v20 = vadd.f32 %v258_v8, %v111_v17 }
  0xe5   :  { %v112_v21 = vadd.f32 %v109_v18, %v86_v10  ;;  %v110_v22 = vmul.f32 %v107_v19, %v89_v14 }
  0xe6   :  { %v117_v23 = vmul.f32 0.7978846, %v114_v20 }
  0xe7   :  { %v113_v24 = vadd.f32 %v110_v22, %v89_v14  ;;  %v115_v25 = vmul.f32 0.7978846, %v112_v21 }
  0xe8   :  { %280 = vtanh.f32 %v117_v23 }
  0xe9   :  { %v116_v26 = vmul.f32 0.7978846, %v113_v24  ;;  %282 = vtanh.f32 %v115_v25 }
  0xeb   :  { %284 = vtanh.f32 %v116_v26 }
  0xf2   :  { %v281_v27 = vpop.eup %280 }
  0xf3   :  { %v283_v28 = vpop.eup %282  ;;  %v123_v29 = vadd.f32 1.0, %v281_v27 }
  0xf4   :  { %v121_v30 = vadd.f32 1.0, %v283_v28 }
  0xf5   :  { %v285_v31 = vpop.eup %284  ;;  %v126_v36 = vmul.f32 %v123_v29, %v102_v32 }
  0xf6   :  { %v122_v35 = vadd.f32 1.0, %v285_v31  ;;  %v124_v37 = vmul.f32 %v121_v30, %v100_v33 }
  0xf7   :  { %v128_v40 = vpack.c.bf16 %v126_v36, %v126_v36 }
  0xf8   :  { %v125_v38 = vmul.f32 %v122_v35, %v101_v34 }
  0xfa   :  { %v127_v39 = vpack.c.bf16 %v125_v38, %v124_v37 }
  0xfc   :  { %268 = vmatprep.mubr.msk.bf16.mxu1 %vm161_vm1, %v127_v39 }
  0xfd   :  { %269 = vmatmul.mubr.msk.bf16.vlgmr.msra.gmra.mrb[0].mxu1 %vm161_vm1, %v128_v40 }
 0x1d0   :  { %v270_v43 = vpop.f32.mrb[0].mxu1 }
 0x1d1   :  { %v221_v44 = vadd.f32 %v270_v43, %v218_v41  ;;  %v202_v45 = vpop.f32.mrb[1].mxu1 }
 0x1d2   :  { %v219_v47 = vadd.f32 %v216_v42, %v202_v45  ;;  %v271_v48 = vpop.f32.mrb[2].mxu1 }
 0x1d3   :  { %225 = vst.msk [vmem:[%s361_s4 + $0x10] sm:$0xf] %vm224_vm2, %v221_v44  ;;  %v205_v49 = vpop.f32.mrb[3].mxu1 }
 0x1d4   :  { %222 = vst.msk [vmem:[%s361_s4] sm:$0xff] %vm45_vm0, %v219_v47  ;;  %v220_v50 = vadd.f32 %v217_v46, %v205_v49 }
 0x1d6   :  { %223 = vst.msk [vmem:[%s361_s4 + $0x8] sm:$0xff] %vm45_vm0, %v220_v50 }

// kernel: _lambda_.25
= control target key start
LH: loop header
LB: loop body
LE: loop exit
PB: predicated region body
PF: predicated region fallthrough
CT: control target
= control target key end

     0   :  { %vm22_vm0 = vcmask 60416   ;;  %v190_v1 = vmov 0.0   ;;  %vm70_vm1 = vcmask 523264   ;;  %vm19_vm2 = vcmask 64512   ;;  %s250_s1 = inlined_call_operand.vmem [shape: bf16[64,8], index: 1, kind: input, shape index: {}]   ;;  %s251_s0 = inlined_call_operand.vmem [shape: bf16[20,64], index: 0, kind: input, shape index: {}]   ;;  %s252_s2 = inlined_call_operand.vmem [shape: f32[1,8], index: 2, kind: input, shape index: {}]   ;;  %s253_s3 = inlined_call_operand.vmem [shape: f32[20,8], index: 3, kind: output, shape index: {}]  }
   0x1   :  { %v184_v0 = vld [vmem:[%s250_s1] sm:$0xff]   ;;  %23 = vst.msk [vmem:[#allocation2 + $0x10] sm:$0xf] %vm22_vm0, %v190_v1  ;;  %v185_v2 = vld [vmem:[%s250_s1 + $0x8] sm:$0xff]   ;;  %v186_v3 = vld [vmem:[%s250_s1 + $0x10] sm:$0xff]  }
   0x2   :  { %171 = vmatprep.subr.bf16.mxu0 %v184_v0  ;;  %v188_v4 = vld [vmem:[%s251_s0] sm:$0xff]   ;;  %v187_v5 = vld [vmem:[%s250_s1 + $0x18] sm:$0xff]   ;;  %v189_v6 = vld [vmem:[%s251_s0 + $0x8] ss:$0 sps:$4 sm:$0x33]   ;;  %20 = vst.msk [vmem:[#allocation2] sm:$0xff] %vm19_vm2, %v190_v1 }
   0x3   :  { %172 = vmatpush3.bf16.msra.mxu0 %v184_v0  ;;  %179 = vmatprep.mubr.msk.bf16.mxu0 %vm70_vm1, %v188_v4  ;;  %21 = vst.msk [vmem:[#allocation2 + $0x8] sm:$0xff] %vm19_vm2, %v190_v1  ;;  %v164_v17 = vld [vmem:[%s252_s2] ss:$0 sm:$0xff] }
   0x4   :  { %173 = vmatprep.subr.bf16.mxu0 %v185_v2 }
   0x7   :  { %174 = vmatpush3.bf16.msra.mxu0 %v185_v2 }
   0x8   :  { %175 = vmatprep.subr.bf16.mxu0 %v186_v3  ;;  %v26_v7 = vld [vmem:[#allocation2 + $0x10] sm:$0xf] }
   0x9   :  { %v24_v8 = vld [vmem:[#allocation2] sm:$0xff] }
   0xa   :  { %v25_v12 = vld [vmem:[#allocation2 + $0x8] sm:$0xff] }
   0xb   :  { %176 = vmatpush3.bf16.msra.mxu0 %v186_v3 }
   0xc   :  { %177 = vmatprep.subr.bf16.mxu0 %v187_v5 }
   0xf   :  { %178 = vmatpush3.bf16.msra.mxu0 %v187_v5 }
  0x12   :  { %180 = vmatmul.mubr.msk.bf16.vlgmr.msra.gmra.mrb[0].mxu0 %vm70_vm1, %v189_v6 }
  0xe5   :  { %v181_v9 = vpop.f32.mrb[0].mxu0 }
  0xe6   :  { %v127_v10 = vadd.f32 %v181_v9, %v26_v7  ;;  %v111_v11 = vpop.f32.mrb[1].mxu0 }
  0xe7   :  { %v125_v13 = vadd.f32 %v111_v11, %v24_v8  ;;  %v182_v14 = vpop.f32.mrb[2].mxu0 }
  0xe8   :  { %132 = vst.msk [vmem:[#allocation2 + $0x10] sm:$0xf] %vm22_vm0, %v127_v10  ;;  %v114_v15 = vpop.f32.mrb[3].mxu0 }
  0xe9   :  { %129 = vst.msk [vmem:[#allocation2] sm:$0xff] %vm19_vm2, %v125_v13  ;;  %v126_v16 = vadd.f32 %v114_v15, %v25_v12 }
  0xeb   :  { %130 = vst.msk [vmem:[#allocation2 + $0x8] sm:$0xff] %vm19_vm2, %v126_v16 }
  0xef   :  { %v138_v18 = vld [vmem:[#allocation2 + $0x10] sm:$0xf] }
  0xf0   :  { %v148_v19 = vadd.f32 %v164_v17, %v138_v18  ;;  %v136_v20 = vld [vmem:[#allocation2] sm:$0xff] }
  0xf1   :  { %v146_v21 = vadd.f32 %v164_v17, %v136_v20 }
  0xf2   :  { %151 = vst.msk [vmem:[%s253_s3 + $0x10] sm:$0xf] %vm22_vm0, %v148_v19  ;;  %v137_v22 = vld [vmem:[#allocation2 + $0x8] sm:$0xff] }
  0xf3   :  { %149 = vst.msk [vmem:[%s253_s3] sm:$0xff] %vm19_vm2, %v146_v21  ;;  %v147_v23 = vadd.f32 %v164_v17, %v137_v22 }
  0xf5   :  { %150 = vst.msk [vmem:[%s253_s3 + $0x8] sm:$0xff] %vm19_vm2, %v147_v23 }

</bundles_post_ra>
